<compile_context>
chip_gen: v7x
topology: tpu7x:2x2x1
jax: 0.10.0
libtpu: 0.0.40
codegen_flags: <defaults>
</compile_context>

<pallas_src>
import numpy as np
import jax
import jax.numpy as jnp
from jax.experimental import pallas as pl
from jax.experimental.pallas import tpu as pltpu


def _round_up(x, m):
    return ((x + m - 1) // m) * m


def trl_kernel(x_ref, kf_ref, g_ref, b_ref, o_ref, q_ref):
    """One grid step = one batch tile; all of H is contracted inside this body.

    x_ref  : (H, TB, WC_pad)   bf16  x[:, :, h, :] with (w, c) flattened, K zero-padded
    kf_ref : (WC_pad, RR_pad)  bf16  kron(F2, F0), zero-padded          (grid-invariant)
    g_ref  : (H*RR_pad, O_pad) bf16  core/F1/F3 projection, flattened   (grid-invariant)
    b_ref  : (1,)              f32   scalar bias (SMEM)
    o_ref  : (TB, O_pad)       f32   lane-dense padded output block
    q_ref  : (TB, H*RR_pad)    bf16  staging buffer for the H-folded second matmul
    """
    H = x_ref.shape[0]
    rr_pad = kf_ref.shape[1]

    # Stage 1: contract the C and W input modes for every h (static unroll; all
    # slices are 128-lane aligned so stores into q_ref are unmasked).
    for h in range(H):
        q_h = jnp.dot(x_ref[h], kf_ref[...], preferred_element_type=jnp.float32)
        q_ref[:, h * rr_pad:(h + 1) * rr_pad] = q_h.astype(q_ref.dtype)

    # Stage 2: single MXU matmul with K = H * RR_pad (H reduction folded into K).
    # Bias is added exactly once, fused with the lane-dense output store.
    out = jnp.dot(q_ref[...], g_ref[...], preferred_element_type=jnp.float32)
    o_ref[...] = out + b_ref[0]


def precompute_trl_operands(core, factors, n_outputs, wc_pad, rr_pad, o_pad,
                            compute_dtype=jnp.bfloat16):
    """Parameter-only preprocessing. Cacheable across forwards (per weight update)."""
    f0, f1, f2, f3 = factors                     # (C,r0) (H,r1) (W,r2) (O,r3)
    C, r0 = f0.shape
    H = f1.shape[0]
    W, r2 = f2.shape
    wc = W * C
    rr = r2 * r0

    # kron(F2, F0): row index (w*C + c), col index (a2*r0 + a0).  Zero-pad so
    # stage-1 operands are lane-dense and Q slices are 128-aligned.
    kf = jnp.kron(f2, f0)
    kf_pad = jnp.zeros((wc_pad, rr_pad), compute_dtype)
    kf_pad = kf_pad.at[:wc, :rr].set(kf.astype(compute_dtype))

    # CF[a0,a1,a2,o] = sum_d core[a0,a1,a2,d] * F3[o,d]
    cf = jnp.einsum("abcd,od->abco", core, f3)                       # (r0,r1,r2,O)
    # G[h, a2, a0, o] = sum_{a1} F1[h,a1] * CF[a0,a1,a2,o]
    g_all = jnp.einsum("hb,abco->hcao", f1, cf).reshape(H, rr, n_outputs)
    g_pad = jnp.zeros((H, rr_pad, o_pad), jnp.float32)
    g_pad = g_pad.at[:, :rr, :n_outputs].set(g_all)
    # Flatten (h, j) into the K dim of the stage-2 matmul, matching q_ref layout.
    g_flat = g_pad.reshape(H * rr_pad, o_pad).astype(compute_dtype)
    return kf_pad, g_flat


def trl_forward(x, core, factors, bias, compute_dtype=jnp.bfloat16):
    B, C, H, W = x.shape
    O = factors[3].shape[0]
    r0 = factors[0].shape[1]
    r2 = factors[2].shape[1]

    wc = W * C
    wc_pad = _round_up(max(wc, 128), 128)        # K of stage-1 matmul, lane-dense
    rr_pad = _round_up(max(r2 * r0, 128), 128)   # rank dim, 128-aligned Q slices
    o_pad = _round_up(max(O, 128), 128)          # lane-dense output stores
    # TODO(synk): round o_pad / rr_pad toward 256-multiples on v6e/v7x (2x256^2 MXU).

    # Batch tile: biggest power-of-two tile that divides B; the grid axis is
    # "parallel" so large B spreads across both v7x TensorCores.
    tb = B
    for cand in (512, 256, 128, 64, 32, 16, 8):
        if B % cand == 0:
            tb = cand
            break

    # TODO(synk): cache (kf_pad, g_flat) per weight update instead of rebuilding
    # on every forward (parameter-only work, independent of x).
    kf_pad, g_flat = precompute_trl_operands(
        core, factors, O, wc_pad, rr_pad, o_pad, compute_dtype)

    # NCHW -> (H, B, W*C) bf16 (+ zero-pad of the contracted dim): one fused
    # layout pass over x so the kernel sees contiguous lane-dense 2-D slabs.
    # TODO(synk): at production sizes eliminate this extra HBM pass over x
    # (producer-side layout or CompilerParams(allow_input_fusion)).
    x3 = jnp.transpose(x, (2, 0, 3, 1)).reshape(H, B, wc)
    if wc_pad != wc:
        x3 = jnp.pad(x3, ((0, 0), (0, 0), (0, wc_pad - wc)))
    x3 = x3.astype(compute_dtype)

    bias = bias.reshape(1).astype(jnp.float32)

    out_pad = pl.pallas_call(
        trl_kernel,
        out_shape=jax.ShapeDtypeStruct((B, o_pad), jnp.float32),
        grid=(B // tb,),
        in_specs=[
            pl.BlockSpec((H, tb, wc_pad), lambda i: (0, i, 0)),      # batch tile of x
            pl.BlockSpec((wc_pad, rr_pad), lambda i: (0, 0)),        # kron(F2, F0)
            pl.BlockSpec((H * rr_pad, o_pad), lambda i: (0, 0)),     # flattened projection
            pl.BlockSpec(memory_space=pltpu.MemorySpace.SMEM),       # scalar bias
        ],
        out_specs=pl.BlockSpec((tb, o_pad), lambda i: (i, 0)),
        scratch_shapes=[pltpu.VMEM((tb, H * rr_pad), compute_dtype)],
        compiler_params=pltpu.CompilerParams(
            dimension_semantics=("parallel",),    # batch tiles only; no reduction axis
            vmem_limit_bytes=32 * 1024 * 1024,    # explicit; fits v5e/v6e/v7x budgets
        ),
    )(x3, kf_pad, g_flat, bias)

    # Padded output columns O..o_pad hold only the bias value; slice them away.
    return out_pad[:, :O]                          # (B, O)


def tucker_to_tensor(core, factors):
    # Reference-only dense reconstruction (NOT used in the hot path).
    return jnp.einsum("abcd,ia,jb,kc,ld->ijkl",
                      core, factors[0], factors[1], factors[2], factors[3])


def init_trl_params(key, input_size, ranks, output_size):
    # Mirrors TRL.__init__: core ~ U(-0.1, 0.1), factors ~ U(-0.1, 0.1), bias = 0 (scalar).
    weight_size = list(input_size[1:]) + list(output_size[1:])
    keys = jax.random.split(key, 1 + len(weight_size))
    core = jax.random.uniform(keys[0], tuple(ranks), jnp.float32, -0.1, 0.1)
    factors = []
    for i, (in_size, rank) in enumerate(zip(weight_size, ranks)):
        factors.append(
            jax.random.uniform(keys[1 + i], (in_size, rank), jnp.float32, -0.1, 0.1)
        )
    bias = jnp.zeros((1,), jnp.float32)
    return core, factors, bias


if __name__ == "__main__":
    # input_size = (batch, C, H, W), output_size = (batch, O), one rank per non-batch mode.
    input_size = (2, 4, 16, 16)
    output_size = (2, 10)
    ranks = (2, 3, 3, 4)

    key = jax.random.PRNGKey(0)
    k_x, k_p = jax.random.split(key)
    x = jax.random.normal(k_x, input_size, jnp.float32)
    core, factors, bias = init_trl_params(k_p, input_size, ranks, output_size)

    out = trl_forward(x, core, factors, bias)
    out = jax.block_until_ready(out)

    # Sanity check against a plain-JAX f32 reference of the same math
    # (tolerances account for the bf16 MXU operands).
    W_ref = tucker_to_tensor(core, factors)
    ref = jnp.einsum("bchw,chwo->bo", x, W_ref) + bias[0]
    assert out.shape == (input_size[0], output_size[1])
    np.testing.assert_allclose(np.asarray(out), np.asarray(ref), rtol=5e-2, atol=5e-6)

    print("KERNEL_OK")
</pallas_src>

<mosaic_0001>
module attributes {stable_mosaic.version = 11 : i64} {
  func.func @trl_kernel(%arg0: i32, %arg1: memref<16x2x128xbf16, #tpu.memory_space<vmem>>, %arg2: memref<128x128xbf16, #tpu.memory_space<vmem>>, %arg3: memref<2048x128xbf16, #tpu.memory_space<vmem>>, %arg4: memref<1xf32, #tpu.memory_space<smem>>, %arg5: memref<2x128xf32, #tpu.memory_space<vmem>>, %arg6: memref<2x2048xbf16, #tpu.memory_space<vmem>>) attributes {dimension_semantics = [#tpu.dimension_semantics<parallel>], iteration_bounds = array<i64: 1>, scalar_prefetch = 0 : i64, scratch_operands = 1 : i64, tpu.core_type = #tpu.core_type<tc>, window_params = [{transform_indices = @transform_0, window_bounds = array<i64: 16, 2, 128>}, {pipeline_mode = #tpu.pipeline_mode<synchronous>, transform_indices = @transform_1, window_bounds = array<i64: 128, 128>}, {pipeline_mode = #tpu.pipeline_mode<synchronous>, transform_indices = @transform_2, window_bounds = array<i64: 2048, 128>}, {transform_indices = @transform_3, window_bounds = array<i64: 1>}, {transform_indices = @transform_4, window_bounds = array<i64: 2, 128>}]} {
    %c0 = arith.constant 0 : index
    %c0_0 = arith.constant 0 : index
    %c0_1 = arith.constant 0 : index
    %0 = vector.load %arg1[%c0, %c0_0, %c0_1] : memref<16x2x128xbf16, #tpu.memory_space<vmem>>, vector<1x2x128xbf16>
    %1 = vector.shape_cast %0 : vector<1x2x128xbf16> to vector<2x128xbf16>
    %c0_2 = arith.constant 0 : index
    %c0_3 = arith.constant 0 : index
    %2 = vector.load %arg2[%c0_2, %c0_3] : memref<128x128xbf16, #tpu.memory_space<vmem>>, vector<128x128xbf16>
    %cst = arith.constant dense<0.000000e+00> : vector<2x128xf32>
    %3 = tpu.matmul %1, %2, %cst {dimension_numbers = #tpu.dot_dimension_numbers<[1], [0], [0], [1], [0, 0, 1, 1], [], []>} : vector<2x128xbf16>, vector<128x128xbf16>, vector<2x128xf32> -> vector<2x128xf32>
    %4 = arith.truncf %3 : vector<2x128xf32> to vector<2x128xbf16>
    %c0_4 = arith.constant 0 : index
    %c0_5 = arith.constant 0 : index
    %5 = vector.load %arg6[%c0_4, %c0_5] : memref<2x2048xbf16, #tpu.memory_space<vmem>>, vector<2x128xbf16>
    tpu.vector_store %arg6[%c0_4, %c0_5], %4 {strides = array<i32>} : memref<2x2048xbf16, #tpu.memory_space<vmem>>, vector<2x128xbf16>,
    %c1 = arith.constant 1 : index
    %c0_6 = arith.constant 0 : index
    %c0_7 = arith.constant 0 : index
    %6 = vector.load %arg1[%c1, %c0_6, %c0_7] : memref<16x2x128xbf16, #tpu.memory_space<vmem>>, vector<1x2x128xbf16>
    %7 = vector.shape_cast %6 : vector<1x2x128xbf16> to vector<2x128xbf16>
    %c0_8 = arith.constant 0 : index
    %c0_9 = arith.constant 0 : index
    %8 = vector.load %arg2[%c0_8, %c0_9] : memref<128x128xbf16, #tpu.memory_space<vmem>>, vector<128x128xbf16>
    %cst_10 = arith.constant dense<0.000000e+00> : vector<2x128xf32>
    %9 = tpu.matmul %7, %8, %cst_10 {dimension_numbers = #tpu.dot_dimension_numbers<[1], [0], [0], [1], [0, 0, 1, 1], [], []>} : vector<2x128xbf16>, vector<128x128xbf16>, vector<2x128xf32> -> vector<2x128xf32>
    %10 = arith.truncf %9 : vector<2x128xf32> to vector<2x128xbf16>
    %c0_11 = arith.constant 0 : index
    %c128 = arith.constant 128 : index
    %11 = vector.load %arg6[%c0_11, %c128] : memref<2x2048xbf16, #tpu.memory_space<vmem>>, vector<2x128xbf16>
    tpu.vector_store %arg6[%c0_11, %c128], %10 {strides = array<i32>} : memref<2x2048xbf16, #tpu.memory_space<vmem>>, vector<2x128xbf16>,
    %c2 = arith.constant 2 : index
    %c0_12 = arith.constant 0 : index
    %c0_13 = arith.constant 0 : index
    %12 = vector.load %arg1[%c2, %c0_12, %c0_13] : memref<16x2x128xbf16, #tpu.memory_space<vmem>>, vector<1x2x128xbf16>
    %13 = vector.shape_cast %12 : vector<1x2x128xbf16> to vector<2x128xbf16>
    %c0_14 = arith.constant 0 : index
    %c0_15 = arith.constant 0 : index
    %14 = vector.load %arg2[%c0_14, %c0_15] : memref<128x128xbf16, #tpu.memory_space<vmem>>, vector<128x128xbf16>
    %cst_16 = arith.constant dense<0.000000e+00> : vector<2x128xf32>
    %15 = tpu.matmul %13, %14, %cst_16 {dimension_numbers = #tpu.dot_dimension_numbers<[1], [0], [0], [1], [0, 0, 1, 1], [], []>} : vector<2x128xbf16>, vector<128x128xbf16>, vector<2x128xf32> -> vector<2x128xf32>
    %16 = arith.truncf %15 : vector<2x128xf32> to vector<2x128xbf16>
    %c0_17 = arith.constant 0 : index
    %c256 = arith.constant 256 : index
    %17 = vector.load %arg6[%c0_17, %c256] : memref<2x2048xbf16, #tpu.memory_space<vmem>>, vector<2x128xbf16>
    tpu.vector_store %arg6[%c0_17, %c256], %16 {strides = array<i32>} : memref<2x2048xbf16, #tpu.memory_space<vmem>>, vector<2x128xbf16>,
    %c3 = arith.constant 3 : index
    %c0_18 = arith.constant 0 : index
    %c0_19 = arith.constant 0 : index
    %18 = vector.load %arg1[%c3, %c0_18, %c0_19] : memref<16x2x128xbf16, #tpu.memory_space<vmem>>, vector<1x2x128xbf16>
    %19 = vector.shape_cast %18 : vector<1x2x128xbf16> to vector<2x128xbf16>
    %c0_20 = arith.constant 0 : index
    %c0_21 = arith.constant 0 : index
    %20 = vector.load %arg2[%c0_20, %c0_21] : memref<128x128xbf16, #tpu.memory_space<vmem>>, vector<128x128xbf16>
    %cst_22 = arith.constant dense<0.000000e+00> : vector<2x128xf32>
    %21 = tpu.matmul %19, %20, %cst_22 {dimension_numbers = #tpu.dot_dimension_numbers<[1], [0], [0], [1], [0, 0, 1, 1], [], []>} : vector<2x128xbf16>, vector<128x128xbf16>, vector<2x128xf32> -> vector<2x128xf32>
    %22 = arith.truncf %21 : vector<2x128xf32> to vector<2x128xbf16>
    %c0_23 = arith.constant 0 : index
    %c384 = arith.constant 384 : index
    %23 = vector.load %arg6[%c0_23, %c384] : memref<2x2048xbf16, #tpu.memory_space<vmem>>, vector<2x128xbf16>
    tpu.vector_store %arg6[%c0_23, %c384], %22 {strides = array<i32>} : memref<2x2048xbf16, #tpu.memory_space<vmem>>, vector<2x128xbf16>,
    %c4 = arith.constant 4 : index
    %c0_24 = arith.constant 0 : index
    %c0_25 = arith.constant 0 : index
    %24 = vector.load %arg1[%c4, %c0_24, %c0_25] : memref<16x2x128xbf16, #tpu.memory_space<vmem>>, vector<1x2x128xbf16>
    %25 = vector.shape_cast %24 : vector<1x2x128xbf16> to vector<2x128xbf16>
    %c0_26 = arith.constant 0 : index
    %c0_27 = arith.constant 0 : index
    %26 = vector.load %arg2[%c0_26, %c0_27] : memref<128x128xbf16, #tpu.memory_space<vmem>>, vector<128x128xbf16>
    %cst_28 = arith.constant dense<0.000000e+00> : vector<2x128xf32>
    %27 = tpu.matmul %25, %26, %cst_28 {dimension_numbers = #tpu.dot_dimension_numbers<[1], [0], [0], [1], [0, 0, 1, 1], [], []>} : vector<2x128xbf16>, vector<128x128xbf16>, vector<2x128xf32> -> vector<2x128xf32>
    %28 = arith.truncf %27 : vector<2x128xf32> to vector<2x128xbf16>
    %c0_29 = arith.constant 0 : index
    %c512 = arith.constant 512 : index
    %29 = vector.load %arg6[%c0_29, %c512] : memref<2x2048xbf16, #tpu.memory_space<vmem>>, vector<2x128xbf16>
    tpu.vector_store %arg6[%c0_29, %c512], %28 {strides = array<i32>} : memref<2x2048xbf16, #tpu.memory_space<vmem>>, vector<2x128xbf16>,
    %c5 = arith.constant 5 : index
    %c0_30 = arith.constant 0 : index
    %c0_31 = arith.constant 0 : index
    %30 = vector.load %arg1[%c5, %c0_30, %c0_31] : memref<16x2x128xbf16, #tpu.memory_space<vmem>>, vector<1x2x128xbf16>
    %31 = vector.shape_cast %30 : vector<1x2x128xbf16> to vector<2x128xbf16>
    %c0_32 = arith.constant 0 : index
    %c0_33 = arith.constant 0 : index
    %32 = vector.load %arg2[%c0_32, %c0_33] : memref<128x128xbf16, #tpu.memory_space<vmem>>, vector<128x128xbf16>
    %cst_34 = arith.constant dense<0.000000e+00> : vector<2x128xf32>
    %33 = tpu.matmul %31, %32, %cst_34 {dimension_numbers = #tpu.dot_dimension_numbers<[1], [0], [0], [1], [0, 0, 1, 1], [], []>} : vector<2x128xbf16>, vector<128x128xbf16>, vector<2x128xf32> -> vector<2x128xf32>
    %34 = arith.truncf %33 : vector<2x128xf32> to vector<2x128xbf16>
    %c0_35 = arith.constant 0 : index
    %c640 = arith.constant 640 : index
    %35 = vector.load %arg6[%c0_35, %c640] : memref<2x2048xbf16, #tpu.memory_space<vmem>>, vector<2x128xbf16>
    tpu.vector_store %arg6[%c0_35, %c640], %34 {strides = array<i32>} : memref<2x2048xbf16, #tpu.memory_space<vmem>>, vector<2x128xbf16>,
    %c6 = arith.constant 6 : index
    %c0_36 = arith.constant 0 : index
    %c0_37 = arith.constant 0 : index
    %36 = vector.load %arg1[%c6, %c0_36, %c0_37] : memref<16x2x128xbf16, #tpu.memory_space<vmem>>, vector<1x2x128xbf16>
    %37 = vector.shape_cast %36 : vector<1x2x128xbf16> to vector<2x128xbf16>
    %c0_38 = arith.constant 0 : index
    %c0_39 = arith.constant 0 : index
    %38 = vector.load %arg2[%c0_38, %c0_39] : memref<128x128xbf16, #tpu.memory_space<vmem>>, vector<128x128xbf16>
    %cst_40 = arith.constant dense<0.000000e+00> : vector<2x128xf32>
    %39 = tpu.matmul %37, %38, %cst_40 {dimension_numbers = #tpu.dot_dimension_numbers<[1], [0], [0], [1], [0, 0, 1, 1], [], []>} : vector<2x128xbf16>, vector<128x128xbf16>, vector<2x128xf32> -> vector<2x128xf32>
    %40 = arith.truncf %39 : vector<2x128xf32> to vector<2x128xbf16>
    %c0_41 = arith.constant 0 : index
    %c768 = arith.constant 768 : index
    %41 = vector.load %arg6[%c0_41, %c768] : memref<2x2048xbf16, #tpu.memory_space<vmem>>, vector<2x128xbf16>
    tpu.vector_store %arg6[%c0_41, %c768], %40 {strides = array<i32>} : memref<2x2048xbf16, #tpu.memory_space<vmem>>, vector<2x128xbf16>,
    %c7 = arith.constant 7 : index
    %c0_42 = arith.constant 0 : index
    %c0_43 = arith.constant 0 : index
    %42 = vector.load %arg1[%c7, %c0_42, %c0_43] : memref<16x2x128xbf16, #tpu.memory_space<vmem>>, vector<1x2x128xbf16>
    %43 = vector.shape_cast %42 : vector<1x2x128xbf16> to vector<2x128xbf16>
    %c0_44 = arith.constant 0 : index
    %c0_45 = arith.constant 0 : index
    %44 = vector.load %arg2[%c0_44, %c0_45] : memref<128x128xbf16, #tpu.memory_space<vmem>>, vector<128x128xbf16>
    %cst_46 = arith.constant dense<0.000000e+00> : vector<2x128xf32>
    %45 = tpu.matmul %43, %44, %cst_46 {dimension_numbers = #tpu.dot_dimension_numbers<[1], [0], [0], [1], [0, 0, 1, 1], [], []>} : vector<2x128xbf16>, vector<128x128xbf16>, vector<2x128xf32> -> vector<2x128xf32>
    %46 = arith.truncf %45 : vector<2x128xf32> to vector<2x128xbf16>
    %c0_47 = arith.constant 0 : index
    %c896 = arith.constant 896 : index
    %47 = vector.load %arg6[%c0_47, %c896] : memref<2x2048xbf16, #tpu.memory_space<vmem>>, vector<2x128xbf16>
    tpu.vector_store %arg6[%c0_47, %c896], %46 {strides = array<i32>} : memref<2x2048xbf16, #tpu.memory_space<vmem>>, vector<2x128xbf16>,
    %c8 = arith.constant 8 : index
    %c0_48 = arith.constant 0 : index
    %c0_49 = arith.constant 0 : index
    %48 = vector.load %arg1[%c8, %c0_48, %c0_49] : memref<16x2x128xbf16, #tpu.memory_space<vmem>>, vector<1x2x128xbf16>
    %49 = vector.shape_cast %48 : vector<1x2x128xbf16> to vector<2x128xbf16>
    %c0_50 = arith.constant 0 : index
    %c0_51 = arith.constant 0 : index
    %50 = vector.load %arg2[%c0_50, %c0_51] : memref<128x128xbf16, #tpu.memory_space<vmem>>, vector<128x128xbf16>
    %cst_52 = arith.constant dense<0.000000e+00> : vector<2x128xf32>
    %51 = tpu.matmul %49, %50, %cst_52 {dimension_numbers = #tpu.dot_dimension_numbers<[1], [0], [0], [1], [0, 0, 1, 1], [], []>} : vector<2x128xbf16>, vector<128x128xbf16>, vector<2x128xf32> -> vector<2x128xf32>
    %52 = arith.truncf %51 : vector<2x128xf32> to vector<2x128xbf16>
    %c0_53 = arith.constant 0 : index
    %c1024 = arith.constant 1024 : index
    %53 = vector.load %arg6[%c0_53, %c1024] : memref<2x2048xbf16, #tpu.memory_space<vmem>>, vector<2x128xbf16>
    tpu.vector_store %arg6[%c0_53, %c1024], %52 {strides = array<i32>} : memref<2x2048xbf16, #tpu.memory_space<vmem>>, vector<2x128xbf16>,
    %c9 = arith.constant 9 : index
    %c0_54 = arith.constant 0 : index
    %c0_55 = arith.constant 0 : index
    %54 = vector.load %arg1[%c9, %c0_54, %c0_55] : memref<16x2x128xbf16, #tpu.memory_space<vmem>>, vector<1x2x128xbf16>
    %55 = vector.shape_cast %54 : vector<1x2x128xbf16> to vector<2x128xbf16>
    %c0_56 = arith.constant 0 : index
    %c0_57 = arith.constant 0 : index
    %56 = vector.load %arg2[%c0_56, %c0_57] : memref<128x128xbf16, #tpu.memory_space<vmem>>, vector<128x128xbf16>
    %cst_58 = arith.constant dense<0.000000e+00> : vector<2x128xf32>
    %57 = tpu.matmul %55, %56, %cst_58 {dimension_numbers = #tpu.dot_dimension_numbers<[1], [0], [0], [1], [0, 0, 1, 1], [], []>} : vector<2x128xbf16>, vector<128x128xbf16>, vector<2x128xf32> -> vector<2x128xf32>
    %58 = arith.truncf %57 : vector<2x128xf32> to vector<2x128xbf16>
    %c0_59 = arith.constant 0 : index
    %c1152 = arith.constant 1152 : index
    %59 = vector.load %arg6[%c0_59, %c1152] : memref<2x2048xbf16, #tpu.memory_space<vmem>>, vector<2x128xbf16>
    tpu.vector_store %arg6[%c0_59, %c1152], %58 {strides = array<i32>} : memref<2x2048xbf16, #tpu.memory_space<vmem>>, vector<2x128xbf16>,
    %c10 = arith.constant 10 : index
    %c0_60 = arith.constant 0 : index
    %c0_61 = arith.constant 0 : index
    %60 = vector.load %arg1[%c10, %c0_60, %c0_61] : memref<16x2x128xbf16, #tpu.memory_space<vmem>>, vector<1x2x128xbf16>
    %61 = vector.shape_cast %60 : vector<1x2x128xbf16> to vector<2x128xbf16>
    %c0_62 = arith.constant 0 : index
    %c0_63 = arith.constant 0 : index
    %62 = vector.load %arg2[%c0_62, %c0_63] : memref<128x128xbf16, #tpu.memory_space<vmem>>, vector<128x128xbf16>
    %cst_64 = arith.constant dense<0.000000e+00> : vector<2x128xf32>
    %63 = tpu.matmul %61, %62, %cst_64 {dimension_numbers = #tpu.dot_dimension_numbers<[1], [0], [0], [1], [0, 0, 1, 1], [], []>} : vector<2x128xbf16>, vector<128x128xbf16>, vector<2x128xf32> -> vector<2x128xf32>
    %64 = arith.truncf %63 : vector<2x128xf32> to vector<2x128xbf16>
    %c0_65 = arith.constant 0 : index
    %c1280 = arith.constant 1280 : index
    %65 = vector.load %arg6[%c0_65, %c1280] : memref<2x2048xbf16, #tpu.memory_space<vmem>>, vector<2x128xbf16>
    tpu.vector_store %arg6[%c0_65, %c1280], %64 {strides = array<i32>} : memref<2x2048xbf16, #tpu.memory_space<vmem>>, vector<2x128xbf16>,
    %c11 = arith.constant 11 : index
    %c0_66 = arith.constant 0 : index
    %c0_67 = arith.constant 0 : index
    %66 = vector.load %arg1[%c11, %c0_66, %c0_67] : memref<16x2x128xbf16, #tpu.memory_space<vmem>>, vector<1x2x128xbf16>
    %67 = vector.shape_cast %66 : vector<1x2x128xbf16> to vector<2x128xbf16>
    %c0_68 = arith.constant 0 : index
    %c0_69 = arith.constant 0 : index
    %68 = vector.load %arg2[%c0_68, %c0_69] : memref<128x128xbf16, #tpu.memory_space<vmem>>, vector<128x128xbf16>
    %cst_70 = arith.constant dense<0.000000e+00> : vector<2x128xf32>
    %69 = tpu.matmul %67, %68, %cst_70 {dimension_numbers = #tpu.dot_dimension_numbers<[1], [0], [0], [1], [0, 0, 1, 1], [], []>} : vector<2x128xbf16>, vector<128x128xbf16>, vector<2x128xf32> -> vector<2x128xf32>
    %70 = arith.truncf %69 : vector<2x128xf32> to vector<2x128xbf16>
    %c0_71 = arith.constant 0 : index
    %c1408 = arith.constant 1408 : index
    %71 = vector.load %arg6[%c0_71, %c1408] : memref<2x2048xbf16, #tpu.memory_space<vmem>>, vector<2x128xbf16>
    tpu.vector_store %arg6[%c0_71, %c1408], %70 {strides = array<i32>} : memref<2x2048xbf16, #tpu.memory_space<vmem>>, vector<2x128xbf16>,
    %c12 = arith.constant 12 : index
    %c0_72 = arith.constant 0 : index
    %c0_73 = arith.constant 0 : index
    %72 = vector.load %arg1[%c12, %c0_72, %c0_73] : memref<16x2x128xbf16, #tpu.memory_space<vmem>>, vector<1x2x128xbf16>
    %73 = vector.shape_cast %72 : vector<1x2x128xbf16> to vector<2x128xbf16>
    %c0_74 = arith.constant 0 : index
    %c0_75 = arith.constant 0 : index
    %74 = vector.load %arg2[%c0_74, %c0_75] : memref<128x128xbf16, #tpu.memory_space<vmem>>, vector<128x128xbf16>
    %cst_76 = arith.constant dense<0.000000e+00> : vector<2x128xf32>
    %75 = tpu.matmul %73, %74, %cst_76 {dimension_numbers = #tpu.dot_dimension_numbers<[1], [0], [0], [1], [0, 0, 1, 1], [], []>} : vector<2x128xbf16>, vector<128x128xbf16>, vector<2x128xf32> -> vector<2x128xf32>
    %76 = arith.truncf %75 : vector<2x128xf32> to vector<2x128xbf16>
    %c0_77 = arith.constant 0 : index
    %c1536 = arith.constant 1536 : index
    %77 = vector.load %arg6[%c0_77, %c1536] : memref<2x2048xbf16, #tpu.memory_space<vmem>>, vector<2x128xbf16>
    tpu.vector_store %arg6[%c0_77, %c1536], %76 {strides = array<i32>} : memref<2x2048xbf16, #tpu.memory_space<vmem>>, vector<2x128xbf16>,
    %c13 = arith.constant 13 : index
    %c0_78 = arith.constant 0 : index
    %c0_79 = arith.constant 0 : index
    %78 = vector.load %arg1[%c13, %c0_78, %c0_79] : memref<16x2x128xbf16, #tpu.memory_space<vmem>>, vector<1x2x128xbf16>
    %79 = vector.shape_cast %78 : vector<1x2x128xbf16> to vector<2x128xbf16>
    %c0_80 = arith.constant 0 : index
    %c0_81 = arith.constant 0 : index
    %80 = vector.load %arg2[%c0_80, %c0_81] : memref<128x128xbf16, #tpu.memory_space<vmem>>, vector<128x128xbf16>
    %cst_82 = arith.constant dense<0.000000e+00> : vector<2x128xf32>
    %81 = tpu.matmul %79, %80, %cst_82 {dimension_numbers = #tpu.dot_dimension_numbers<[1], [0], [0], [1], [0, 0, 1, 1], [], []>} : vector<2x128xbf16>, vector<128x128xbf16>, vector<2x128xf32> -> vector<2x128xf32>
    %82 = arith.truncf %81 : vector<2x128xf32> to vector<2x128xbf16>
    %c0_83 = arith.constant 0 : index
    %c1664 = arith.constant 1664 : index
    %83 = vector.load %arg6[%c0_83, %c1664] : memref<2x2048xbf16, #tpu.memory_space<vmem>>, vector<2x128xbf16>
    tpu.vector_store %arg6[%c0_83, %c1664], %82 {strides = array<i32>} : memref<2x2048xbf16, #tpu.memory_space<vmem>>, vector<2x128xbf16>,
    %c14 = arith.constant 14 : index
    %c0_84 = arith.constant 0 : index
    %c0_85 = arith.constant 0 : index
    %84 = vector.load %arg1[%c14, %c0_84, %c0_85] : memref<16x2x128xbf16, #tpu.memory_space<vmem>>, vector<1x2x128xbf16>
    %85 = vector.shape_cast %84 : vector<1x2x128xbf16> to vector<2x128xbf16>
    %c0_86 = arith.constant 0 : index
    %c0_87 = arith.constant 0 : index
    %86 = vector.load %arg2[%c0_86, %c0_87] : memref<128x128xbf16, #tpu.memory_space<vmem>>, vector<128x128xbf16>
    %cst_88 = arith.constant dense<0.000000e+00> : vector<2x128xf32>
    %87 = tpu.matmul %85, %86, %cst_88 {dimension_numbers = #tpu.dot_dimension_numbers<[1], [0], [0], [1], [0, 0, 1, 1], [], []>} : vector<2x128xbf16>, vector<128x128xbf16>, vector<2x128xf32> -> vector<2x128xf32>
    %88 = arith.truncf %87 : vector<2x128xf32> to vector<2x128xbf16>
    %c0_89 = arith.constant 0 : index
    %c1792 = arith.constant 1792 : index
    %89 = vector.load %arg6[%c0_89, %c1792] : memref<2x2048xbf16, #tpu.memory_space<vmem>>, vector<2x128xbf16>
    tpu.vector_store %arg6[%c0_89, %c1792], %88 {strides = array<i32>} : memref<2x2048xbf16, #tpu.memory_space<vmem>>, vector<2x128xbf16>,
    %c15 = arith.constant 15 : index
    %c0_90 = arith.constant 0 : index
    %c0_91 = arith.constant 0 : index
    %90 = vector.load %arg1[%c15, %c0_90, %c0_91] : memref<16x2x128xbf16, #tpu.memory_space<vmem>>, vector<1x2x128xbf16>
    %91 = vector.shape_cast %90 : vector<1x2x128xbf16> to vector<2x128xbf16>
    %c0_92 = arith.constant 0 : index
    %c0_93 = arith.constant 0 : index
    %92 = vector.load %arg2[%c0_92, %c0_93] : memref<128x128xbf16, #tpu.memory_space<vmem>>, vector<128x128xbf16>
    %cst_94 = arith.constant dense<0.000000e+00> : vector<2x128xf32>
    %93 = tpu.matmul %91, %92, %cst_94 {dimension_numbers = #tpu.dot_dimension_numbers<[1], [0], [0], [1], [0, 0, 1, 1], [], []>} : vector<2x128xbf16>, vector<128x128xbf16>, vector<2x128xf32> -> vector<2x128xf32>
    %94 = arith.truncf %93 : vector<2x128xf32> to vector<2x128xbf16>
    %c0_95 = arith.constant 0 : index
    %c1920 = arith.constant 1920 : index
    %95 = vector.load %arg6[%c0_95, %c1920] : memref<2x2048xbf16, #tpu.memory_space<vmem>>, vector<2x128xbf16>
    tpu.vector_store %arg6[%c0_95, %c1920], %94 {strides = array<i32>} : memref<2x2048xbf16, #tpu.memory_space<vmem>>, vector<2x128xbf16>,
    %c0_96 = arith.constant 0 : index
    %c0_97 = arith.constant 0 : index
    %96 = vector.load %arg6[%c0_96, %c0_97] : memref<2x2048xbf16, #tpu.memory_space<vmem>>, vector<2x2048xbf16>
    %c0_98 = arith.constant 0 : index
    %c0_99 = arith.constant 0 : index
    %97 = vector.load %arg3[%c0_98, %c0_99] : memref<2048x128xbf16, #tpu.memory_space<vmem>>, vector<2048x128xbf16>
    %cst_100 = arith.constant dense<0.000000e+00> : vector<2x128xf32>
    %98 = tpu.matmul %96, %97, %cst_100 {dimension_numbers = #tpu.dot_dimension_numbers<[1], [0], [0], [1], [0, 0, 1, 1], [], []>} : vector<2x2048xbf16>, vector<2048x128xbf16>, vector<2x128xf32> -> vector<2x128xf32>
    %c0_101 = arith.constant 0 : index
    %99 = memref.load %arg4[%c0_101] : memref<1xf32, #tpu.memory_space<smem>>
    %100 = vector.broadcast %99 : f32 to vector<2x128xf32>
    %101 = arith.addf %98, %100 : vector<2x128xf32>
    %c0_102 = arith.constant 0 : index
    %c0_103 = arith.constant 0 : index
    %102 = vector.load %arg5[%c0_102, %c0_103] : memref<2x128xf32, #tpu.memory_space<vmem>>, vector<2x128xf32>
    tpu.vector_store %arg5[%c0_102, %c0_103], %101 {strides = array<i32>} : memref<2x128xf32, #tpu.memory_space<vmem>>, vector<2x128xf32>,
    return
  }
  func.func @transform_0(%arg0: i32) -> (i32, i32, i32) {
    %c0_i32 = arith.constant 0 : i32
    %c0_i32_0 = arith.constant 0 : i32
    %c0_i32_1 = arith.constant 0 : i32
    return %c0_i32, %arg0, %c0_i32_0 : i32, i32, i32
  }
  func.func @transform_1(%arg0: i32) -> (i32, i32) {
    %c0_i32 = arith.constant 0 : i32
    %c0_i32_0 = arith.constant 0 : i32
    %c0_i32_1 = arith.constant 0 : i32
    return %c0_i32, %c0_i32_0 : i32, i32
  }
  func.func @transform_2(%arg0: i32) -> (i32, i32) {
    %c0_i32 = arith.constant 0 : i32
    %c0_i32_0 = arith.constant 0 : i32
    %c0_i32_1 = arith.constant 0 : i32
    return %c0_i32, %c0_i32_0 : i32, i32
  }
  func.func @transform_3(%arg0: i32) -> i32 {
    %c0_i32 = arith.constant 0 : i32
    %c0_i32_0 = arith.constant 0 : i32
    return %c0_i32 : i32
  }
  func.func @transform_4(%arg0: i32) -> (i32, i32) {
    %c0_i32 = arith.constant 0 : i32
    %c0_i32_0 = arith.constant 0 : i32
    return %arg0, %c0_i32 : i32, i32
  }
}

</mosaic_0001>

<bundles_post_ra>
// kernel: tpu_custom_call.1
= control target key start
LH: loop header
LB: loop body
LE: loop exit
PB: predicated region body
PF: predicated region fallthrough
CT: control target
= control target key end

     0   :  { %10 = vsyncpa [#allocation5], 0  ;;  %s4805_s0 = inlined_call_operand.hbm [shape: bf16[16,2,128], index: 0, kind: input, shape index: {}]   ;;  %s4806_s1 = inlined_call_operand.hbm [shape: bf16[128,128], index: 1, kind: input, shape index: {}]   ;;  %s4807_s2 = inlined_call_operand.hbm [shape: bf16[2048,128], index: 2, kind: input, shape index: {}]   ;;  %s4808_s3 = inlined_call_operand.<no memory space> [shape: f32[1], index: 3, kind: input, shape index: {}]   ;;  %s4809_s4 = inlined_call_operand.hbm [shape: f32[2,128], index: 4, kind: output, shape index: {}]  }
   0x1   :  { %11 = vsyncpa [#allocation8], 0 }
   0x2   :  { %12 = vsyncpa [#allocation6], 0  ;;  %s4528_s15 = smov [#allocation7]   ;;  %s4434_s19 = scalar_lea.hbm %s4806_s1, 1024 }
   0x3   :  { %s30_s16 = sshll.u32 %s4528_s15, 4  ;;  %p4435_p0 = scmp.ne.s32.totalorder %s4806_s1, %s4434_s19  ;;  %s31_s16 = int_to_ptr.vmem [resolvable:$true] %s30_s16 }
   0x4   :  { %p4438_p1 = scmp.lt.u32.totalorder %s4434_s19, %s4806_s1 }
   0x6   :  { %p4440_p2 = pnand %p4438_p1, %p4435_p0 }
   0x8   :  { %4443 = shalt.err (!%p4440_p2)
}
   0x9   :  { %s4444_s24 = scalar_lea.vmem %s31_s16, 1024  ;;  %p4449_p4 = scmp.lt.s32.totalorder %s31_s16, %s31_s16 }
   0xa   :  { %p4445_p3 = scmp.ne.s32.totalorder %s31_s16, %s4444_s24  ;;  %p4450_p5 = scmp.lt.s32.totalorder %s4444_s24, %s4444_s24 }
   0xc   :  { %p4451_p6 = por %p4450_p5, %p4449_p4 }
   0xe   :  { %p4452_p7 = pnand %p4451_p6, %p4445_p3 }
  0x10   :  { %4455 = shalt.err (!%p4452_p7)
}
  0x11   :  { %s4529_s25 = smov 64   ;;  %s4530_s26 = smov 4  }
  0x12   :  { %36 = dma.hbm_to_vmem [thread:$0]  %s4806_s1, 1024, %s31_s16, [#allocation8], %s4529_s25, %s4529_s25, %s4530_s26  }
  0x13   :  { %s4531_s29 = smov [#allocation4]   ;;  %s4456_s7 = scalar_lea.hbm %s4805_s0, 256 }
  0x14   :  { %s18_s30 = sshll.u32 %s4531_s29, 4  ;;  %p4457_p8 = scmp.ne.s32.totalorder %s4805_s0, %s4456_s7  ;;  %s19_s30 = int_to_ptr.vmem [resolvable:$true] %s18_s30 }
  0x15   :  { %p4460_p9 = scmp.lt.u32.totalorder %s4456_s7, %s4805_s0 }
  0x17   :  { %p4462_p10 = pnand %p4460_p9, %p4457_p8 }
  0x19   :  { %4465 = shalt.err (!%p4462_p10)
}
  0x1a   :  { %s4466_s12 = scalar_lea.vmem %s19_s30, 256  ;;  %p4471_p12 = scmp.lt.s32.totalorder %s19_s30, %s19_s30 }
  0x1b   :  { %p4467_p11 = scmp.ne.s32.totalorder %s19_s30, %s4466_s12  ;;  %p4472_p13 = scmp.lt.s32.totalorder %s4466_s12, %s4466_s12 }
  0x1d   :  { %p4473_p0 = por %p4472_p13, %p4471_p12 }
  0x1f   :  { %p4474_p1 = pnand %p4473_p0, %p4467_p11 }
  0x21   :  { %4477 = shalt.err (!%p4474_p1)
}
  0x22   :  { %s4532_s1 = smov 16   ;;  %s4533_s13 = smov 1  }
  0x23   :  { %24 = dma.hbm_to_vmem [thread:$0]  %s4805_s0, 256, %s19_s30, [#allocation5], %s4532_s1, %s4532_s1, %s4533_s13  }
  0x24   :  { %s4534_s16 = smov [#allocation9]   ;;  %s4478_s20 = scalar_lea.hbm %s4807_s2, 16384 }
  0x25   :  { %s42_s17 = sshll.u32 %s4534_s16, 4  ;;  %p4479_p2 = scmp.ne.s32.totalorder %s4807_s2, %s4478_s20  ;;  %s43_s17 = int_to_ptr.vmem [resolvable:$true] %s42_s17 }
  0x26   :  { %p4482_p3 = scmp.lt.u32.totalorder %s4478_s20, %s4807_s2 }
  0x28   :  { %p4484_p4 = pnand %p4482_p3, %p4479_p2 }
  0x2a   :  { %4487 = shalt.err (!%p4484_p4)
}
  0x2b   :  { %s4488_s27 = scalar_lea.vmem %s43_s17, 16384  ;;  %p4493_p6 = scmp.lt.s32.totalorder %s43_s17, %s43_s17 }
  0x2c   :  { %p4489_p5 = scmp.ne.s32.totalorder %s43_s17, %s4488_s27  ;;  %p4494_p7 = scmp.lt.s32.totalorder %s4488_s27, %s4488_s27 }
  0x2e   :  { %p4495_p8 = por %p4494_p7, %p4493_p6 }
  0x30   :  { %p4496_p9 = pnand %p4495_p8, %p4489_p5 }
  0x32   :  { %4499 = shalt.err (!%p4496_p9)
}
  0x33   :  { %48 = dma.hbm_to_vmem [thread:$0]  %s4807_s2, 16384, %s43_s17, [#allocation8], %s4529_s25, %s4529_s25, %s4530_s26  }
  0x34   :  { %4522 = dma.done.wait [#allocation5], 256  }
  0x35   :  { %4523 = vsyncadd [#allocation5], 4294967040 }
  0x36   :  { %4524 = dma.done.wait [#allocation8], 17408  }
  0x37   :  { %4525 = vsyncadd [#allocation8], 4294949888  ;;  %v4535_v0 = vmov 0.0   ;;  %vm4536_vm0 = vmmov 0   ;;  %v4176_v1 = vld [vmem:[#allocation7] sm:$0xff]   ;;  %v4178_v3 = vld [vmem:[#allocation7 + $0x8] sm:$0xff]  }
  0x38   :  { %3845 = vmatprep.subr.bf16.mxu0 %v4535_v0  ;;  %3865 = vmatprep.subr.bf16.mxu1 %v4535_v0  ;;  %v4177_v2 = vld [vmem:[#allocation7] sm:$0xff]   ;;  %v4179_v4 = vld [vmem:[#allocation7 + $0x8] sm:$0xff]   ;;  %v4180_v5 = vld [vmem:[#allocation7 + $0x10] sm:$0xff]  }
  0x39   :  { %3861 = vmatprep.mubr.msk.bf16.mxu0 %vm4536_vm0, %v4535_v0  ;;  %3881 = vmatprep.mubr.msk.bf16.mxu1 %vm4536_vm0, %v4535_v0  ;;  %v4181_v6 = vld [vmem:[#allocation7 + $0x10] sm:$0xff]   ;;  %v4182_v7 = vld [vmem:[#allocation7 + $0x18] sm:$0xff]   ;;  %v4184_v9 = vld [vmem:[#allocation7 + $0x20] sm:$0xff]  }
  0x3a   :  { %3846 = vmatpush3.bf16.msra.mxu0 %v4176_v1  ;;  %3866 = vmatpush3.bf16.msra.mxu1 %v4177_v2  ;;  %v4183_v8 = vld [vmem:[#allocation7 + $0x18] sm:$0xff]   ;;  %v4185_v10 = vld [vmem:[#allocation7 + $0x20] sm:$0xff]   ;;  %v4186_v11 = vld [vmem:[#allocation7 + $0x28] sm:$0xff]  }
  0x3b   :  { %3847 = vmatprep.subr.bf16.mxu0 %v4535_v0  ;;  %3867 = vmatprep.subr.bf16.mxu1 %v4535_v0  ;;  %v4187_v12 = vld [vmem:[#allocation7 + $0x28] sm:$0xff]   ;;  %v4188_v13 = vld [vmem:[#allocation7 + $0x30] sm:$0xff]   ;;  %v4190_v15 = vld [vmem:[#allocation7 + $0x38] sm:$0xff]  }
  0x3c   :  { %v4189_v14 = vld [vmem:[#allocation7 + $0x30] sm:$0xff]   ;;  %v4191_v16 = vld [vmem:[#allocation7 + $0x38] sm:$0xff]   ;;  %v4192_v19 = vld [vmem:[#allocation7] sm:$0xff]  }
  0x3d   :  { %v61_v17 = vld [vmem:[#allocation4] sm:$0x1]  ;;  %v169_v18 = vld [vmem:[#allocation4 + $0x1] sm:$0x1]  ;;  %v4193_v20 = vld [vmem:[#allocation7] sm:$0xff]  }
  0x3e   :  { %3848 = vmatpush3.bf16.msra.mxu0 %v4178_v3  ;;  %3868 = vmatpush3.bf16.msra.mxu1 %v4179_v4  ;;  %v4194_v21 = vld [vmem:[#allocation7 + $0x8] sm:$0xff]   ;;  %v4196_v23 = vld [vmem:[#allocation7 + $0x10] sm:$0xff]   ;;  %v4198_v25 = vld [vmem:[#allocation7 + $0x18] sm:$0xff]  }
  0x3f   :  { %3849 = vmatprep.subr.bf16.mxu0 %v4535_v0  ;;  %3869 = vmatprep.subr.bf16.mxu1 %v4535_v0  ;;  %v4195_v22 = vld [vmem:[#allocation7 + $0x8] sm:$0xff]   ;;  %v4197_v24 = vld [vmem:[#allocation7 + $0x10] sm:$0xff]   ;;  %v4199_v26 = vld [vmem:[#allocation7 + $0x18] sm:$0xff]  }
  0x40   :  { %v4200_v27 = vld [vmem:[#allocation7 + $0x20] sm:$0xff]   ;;  %v4202_v29 = vld [vmem:[#allocation7 + $0x28] sm:$0xff]   ;;  %v4204_v31 = vld [vmem:[#allocation7 + $0x30] sm:$0xff]  }
  0x41   :  { %v4201_v28 = vld [vmem:[#allocation7 + $0x20] sm:$0xff]   ;;  %v4203_v30 = vld [vmem:[#allocation7 + $0x28] sm:$0xff]   ;;  %v4205_v32 = vld [vmem:[#allocation7 + $0x30] sm:$0xff]  }
  0x42   :  { %3850 = vmatpush3.bf16.msra.mxu0 %v4180_v5  ;;  %3870 = vmatpush3.bf16.msra.mxu1 %v4181_v6  ;;  %v4206_v33 = vld [vmem:[#allocation7 + $0x38] sm:$0xff]   ;;  %v277_v35 = vld [vmem:[#allocation4 + $0x2] sm:$0x1]  ;;  %v385_v36 = vld [vmem:[#allocation4 + $0x3] sm:$0x1] }
  0x43   :  { %3851 = vmatprep.subr.bf16.mxu0 %v4535_v0  ;;  %3871 = vmatprep.subr.bf16.mxu1 %v4535_v0  ;;  %v4207_v34 = vld [vmem:[#allocation7 + $0x38] sm:$0xff]   ;;  %v4208_v37 = vld [vmem:[#allocation7] sm:$0xff]   ;;  %v4210_v39 = vld [vmem:[#allocation7 + $0x8] sm:$0xff]  }
  0x44   :  { %v4209_v38 = vld [vmem:[#allocation7] sm:$0xff]   ;;  %v4211_v40 = vld [vmem:[#allocation7 + $0x8] sm:$0xff]   ;;  %v4212_v41 = vld [vmem:[#allocation7 + $0x10] sm:$0xff]  }
  0x45   :  { %v4213_v42 = vld [vmem:[#allocation7 + $0x10] sm:$0xff]   ;;  %v4214_v43 = vld [vmem:[#allocation7 + $0x18] sm:$0xff]   ;;  %v4216_v45 = vld [vmem:[#allocation7 + $0x20] sm:$0xff]  }
  0x46   :  { %3852 = vmatpush3.bf16.msra.mxu0 %v4182_v7  ;;  %3872 = vmatpush3.bf16.msra.mxu1 %v4183_v8  ;;  %v4215_v44 = vld [vmem:[#allocation7 + $0x18] sm:$0xff]   ;;  %v4217_v46 = vld [vmem:[#allocation7 + $0x20] sm:$0xff]   ;;  %v4218_v47 = vld [vmem:[#allocation7 + $0x28] sm:$0xff]  }
  0x47   :  { %3853 = vmatprep.subr.bf16.mxu0 %v4535_v0  ;;  %3873 = vmatprep.subr.bf16.mxu1 %v4535_v0  ;;  %v4219_v48 = vld [vmem:[#allocation7 + $0x28] sm:$0xff]   ;;  %v4220_v49 = vld [vmem:[#allocation7 + $0x30] sm:$0xff]   ;;  %v4222_v51 = vld [vmem:[#allocation7 + $0x38] sm:$0xff]  }
  0x48   :  { %v4221_v50 = vld [vmem:[#allocation7 + $0x30] sm:$0xff]   ;;  %v4223_v52 = vld [vmem:[#allocation7 + $0x38] sm:$0xff]   ;;  %v4224_v55 = vld [vmem:[#allocation7] sm:$0xff]  }
  0x49   :  { %v493_v53 = vld [vmem:[#allocation4 + $0x4] sm:$0x1]  ;;  %v601_v54 = vld [vmem:[#allocation4 + $0x5] sm:$0x1]  ;;  %v4225_v56 = vld [vmem:[#allocation7] sm:$0xff]  }
  0x4a   :  { %3854 = vmatpush3.bf16.msra.mxu0 %v4184_v9  ;;  %3874 = vmatpush3.bf16.msra.mxu1 %v4185_v10  ;;  %v4226_v57 = vld [vmem:[#allocation7 + $0x8] sm:$0xff]   ;;  %v4228_v59 = vld [vmem:[#allocation7 + $0x10] sm:$0xff]   ;;  %v4230_v61 = vld [vmem:[#allocation7 + $0x18] sm:$0xff]  }
  0x4b   :  { %3855 = vmatprep.subr.bf16.mxu0 %v4535_v0  ;;  %3875 = vmatprep.subr.bf16.mxu1 %v4535_v0  ;;  %v4227_v58 = vld [vmem:[#allocation7 + $0x8] sm:$0xff]   ;;  %v4229_v60 = vld [vmem:[#allocation7 + $0x10] sm:$0xff]   ;;  %v4231_v62 = vld [vmem:[#allocation7 + $0x18] sm:$0xff]  }
  0x4c   :  { %v4232_v63 = vld [vmem:[#allocation7 + $0x20] sm:$0xff]   ;;  %v4234_v2 = vld [vmem:[#allocation7 + $0x28] sm:$0xff]   ;;  %v4236_v4 = vld [vmem:[#allocation7 + $0x30] sm:$0xff]  }
  0x4d   :  { %v4233_v1 = vld [vmem:[#allocation7 + $0x20] sm:$0xff]   ;;  %v4235_v3 = vld [vmem:[#allocation7 + $0x28] sm:$0xff]   ;;  %v4237_v5 = vld [vmem:[#allocation7 + $0x30] sm:$0xff]  }
  0x4e   :  { %3856 = vmatpush3.bf16.msra.mxu0 %v4186_v11  ;;  %3876 = vmatpush3.bf16.msra.mxu1 %v4187_v12  ;;  %v4238_v6 = vld [vmem:[#allocation7 + $0x38] sm:$0xff]   ;;  %v709_v8 = vld [vmem:[#allocation4 + $0x6] sm:$0x1]  ;;  %v817_v9 = vld [vmem:[#allocation4 + $0x7] sm:$0x1] }
  0x4f   :  { %3857 = vmatprep.subr.bf16.mxu0 %v4535_v0  ;;  %3877 = vmatprep.subr.bf16.mxu1 %v4535_v0  ;;  %v4239_v7 = vld [vmem:[#allocation7 + $0x38] sm:$0xff]   ;;  %v4240_v10 = vld [vmem:[#allocation7] sm:$0xff]   ;;  %v4242_v12 = vld [vmem:[#allocation7 + $0x8] sm:$0xff]  }
  0x50   :  { %v4241_v11 = vld [vmem:[#allocation7] sm:$0xff]  }
  0x52   :  { %3858 = vmatpush3.bf16.msra.mxu0 %v4188_v13  ;;  %3878 = vmatpush3.bf16.msra.mxu1 %v4189_v14  ;;  %v4243_v13 = vld [vmem:[#allocation7 + $0x8] sm:$0xff]   ;;  %v4244_v14 = vld [vmem:[#allocation7 + $0x10] sm:$0xff]  }
  0x53   :  { %3859 = vmatprep.subr.bf16.mxu0 %v4535_v0  ;;  %3879 = vmatprep.subr.bf16.mxu1 %v4535_v0 }
  0x56   :  { %3860 = vmatpush3.bf16.msra.mxu0 %v4190_v15  ;;  %3880 = vmatpush3.bf16.msra.mxu1 %v4191_v16  ;;  %v4245_v15 = vld [vmem:[#allocation7 + $0x10] sm:$0xff]   ;;  %v4246_v16 = vld [vmem:[#allocation7 + $0x18] sm:$0xff]  }
  0x57   :  { %3885 = vmatprep.subr.bf16.mxu0 %v4535_v0  ;;  %3905 = vmatprep.subr.bf16.mxu1 %v4535_v0 }
  0x59   :  { %3862 = vmatmul.mubr.bf16.vlgmr.msra.gmra.mrb[0].mxu0 %v61_v17  ;;  %3882 = vmatmul.mubr.bf16.vlgmr.msra.gmra.mrb[0].mxu1 %v169_v18  ;;  %v4247_v17 = vld [vmem:[#allocation7 + $0x18] sm:$0xff]   ;;  %v4248_v18 = vld [vmem:[#allocation7 + $0x20] sm:$0xff]  }
  0x5a   :  { %3886 = vmatpush3.bf16.msra.mxu0 %v4192_v19  ;;  %3906 = vmatpush3.bf16.msra.mxu1 %v4193_v20  ;;  %v4249_v19 = vld [vmem:[#allocation7 + $0x20] sm:$0xff]   ;;  %v4250_v20 = vld [vmem:[#allocation7 + $0x28] sm:$0xff]  }
  0x5b   :  { %3887 = vmatprep.subr.bf16.mxu0 %v4535_v0  ;;  %3907 = vmatprep.subr.bf16.mxu1 %v4535_v0 }
  0x5c   :  { %3901 = vmatprep.mubr.msk.bf16.mxu0 %vm4536_vm0, %v4535_v0  ;;  %3921 = vmatprep.mubr.msk.bf16.mxu1 %vm4536_vm0, %v4535_v0 }
  0x5e   :  { %3888 = vmatpush3.bf16.msra.mxu0 %v4194_v21  ;;  %3908 = vmatpush3.bf16.msra.mxu1 %v4195_v22  ;;  %v4251_v21 = vld [vmem:[#allocation7 + $0x28] sm:$0xff]   ;;  %v4252_v22 = vld [vmem:[#allocation7 + $0x30] sm:$0xff]  }
  0x5f   :  { %3889 = vmatprep.subr.bf16.mxu0 %v4535_v0  ;;  %3909 = vmatprep.subr.bf16.mxu1 %v4535_v0 }
  0x62   :  { %3890 = vmatpush3.bf16.msra.mxu0 %v4196_v23  ;;  %3910 = vmatpush3.bf16.msra.mxu1 %v4197_v24  ;;  %v4253_v23 = vld [vmem:[#allocation7 + $0x30] sm:$0xff]   ;;  %v4254_v24 = vld [vmem:[#allocation7 + $0x38] sm:$0xff]  }
  0x63   :  { %3891 = vmatprep.subr.bf16.mxu0 %v4535_v0  ;;  %3911 = vmatprep.subr.bf16.mxu1 %v4535_v0 }
  0x66   :  { %3892 = vmatpush3.bf16.msra.mxu0 %v4198_v25  ;;  %3912 = vmatpush3.bf16.msra.mxu1 %v4199_v26  ;;  %v4255_v25 = vld [vmem:[#allocation7 + $0x38] sm:$0xff]  }
  0x67   :  { %3893 = vmatprep.subr.bf16.mxu0 %v4535_v0  ;;  %3913 = vmatprep.subr.bf16.mxu1 %v4535_v0  ;;  %v925_v26 = vld [vmem:[#allocation4 + $0x8] sm:$0x1] }
  0x6a   :  { %3894 = vmatpush3.bf16.msra.mxu0 %v4200_v27  ;;  %3914 = vmatpush3.bf16.msra.mxu1 %v4201_v28  ;;  %v4256_v27 = vld [vmem:[#allocation7] sm:$0xff]   ;;  %v1033_v28 = vld [vmem:[#allocation4 + $0x9] sm:$0x1] }
  0x6b   :  { %3895 = vmatprep.subr.bf16.mxu0 %v4535_v0  ;;  %3915 = vmatprep.subr.bf16.mxu1 %v4535_v0 }
  0x6e   :  { %3896 = vmatpush3.bf16.msra.mxu0 %v4202_v29  ;;  %3916 = vmatpush3.bf16.msra.mxu1 %v4203_v30  ;;  %v4257_v29 = vld [vmem:[#allocation7] sm:$0xff]   ;;  %v4258_v30 = vld [vmem:[#allocation7 + $0x8] sm:$0xff]  }
  0x6f   :  { %3897 = vmatprep.subr.bf16.mxu0 %v4535_v0  ;;  %3917 = vmatprep.subr.bf16.mxu1 %v4535_v0 }
  0x72   :  { %3898 = vmatpush3.bf16.msra.mxu0 %v4204_v31  ;;  %3918 = vmatpush3.bf16.msra.mxu1 %v4205_v32  ;;  %v4259_v31 = vld [vmem:[#allocation7 + $0x8] sm:$0xff]   ;;  %v4260_v32 = vld [vmem:[#allocation7 + $0x10] sm:$0xff]  }
  0x73   :  { %3899 = vmatprep.subr.bf16.mxu0 %v4535_v0  ;;  %3919 = vmatprep.subr.bf16.mxu1 %v4535_v0 }
  0x76   :  { %3900 = vmatpush3.bf16.msra.mxu0 %v4206_v33  ;;  %3920 = vmatpush3.bf16.msra.mxu1 %v4207_v34  ;;  %v4261_v33 = vld [vmem:[#allocation7 + $0x10] sm:$0xff]   ;;  %v4262_v34 = vld [vmem:[#allocation7 + $0x18] sm:$0xff]  }
  0x77   :  { %3925 = vmatprep.subr.bf16.mxu0 %v4535_v0  ;;  %3945 = vmatprep.subr.bf16.mxu1 %v4535_v0 }
  0x79   :  { %3902 = vmatmul.mubr.bf16.vlgmr.msra.gmra.mrb[4].mxu0 %v277_v35  ;;  %3922 = vmatmul.mubr.bf16.vlgmr.msra.gmra.mrb[4].mxu1 %v385_v36  ;;  %v4263_v35 = vld [vmem:[#allocation7 + $0x18] sm:$0xff]   ;;  %v4264_v36 = vld [vmem:[#allocation7 + $0x20] sm:$0xff]  }
  0x7a   :  { %3926 = vmatpush3.bf16.msra.mxu0 %v4208_v37  ;;  %3946 = vmatpush3.bf16.msra.mxu1 %v4209_v38  ;;  %v4265_v37 = vld [vmem:[#allocation7 + $0x20] sm:$0xff]   ;;  %v4266_v38 = vld [vmem:[#allocation7 + $0x28] sm:$0xff]  }
  0x7b   :  { %3927 = vmatprep.subr.bf16.mxu0 %v4535_v0  ;;  %3947 = vmatprep.subr.bf16.mxu1 %v4535_v0 }
  0x7c   :  { %3941 = vmatprep.mubr.msk.bf16.mxu0 %vm4536_vm0, %v4535_v0  ;;  %3961 = vmatprep.mubr.msk.bf16.mxu1 %vm4536_vm0, %v4535_v0 }
  0x7e   :  { %3928 = vmatpush3.bf16.msra.mxu0 %v4210_v39  ;;  %3948 = vmatpush3.bf16.msra.mxu1 %v4211_v40  ;;  %v4267_v39 = vld [vmem:[#allocation7 + $0x28] sm:$0xff]   ;;  %v4268_v40 = vld [vmem:[#allocation7 + $0x30] sm:$0xff]  }
  0x7f   :  { %3929 = vmatprep.subr.bf16.mxu0 %v4535_v0  ;;  %3949 = vmatprep.subr.bf16.mxu1 %v4535_v0 }
  0x82   :  { %3930 = vmatpush3.bf16.msra.mxu0 %v4212_v41  ;;  %3950 = vmatpush3.bf16.msra.mxu1 %v4213_v42  ;;  %v4269_v41 = vld [vmem:[#allocation7 + $0x30] sm:$0xff]   ;;  %v4270_v42 = vld [vmem:[#allocation7 + $0x38] sm:$0xff]  }
  0x83   :  { %3931 = vmatprep.subr.bf16.mxu0 %v4535_v0  ;;  %3951 = vmatprep.subr.bf16.mxu1 %v4535_v0 }
  0x86   :  { %3932 = vmatpush3.bf16.msra.mxu0 %v4214_v43  ;;  %3952 = vmatpush3.bf16.msra.mxu1 %v4215_v44  ;;  %v4271_v43 = vld [vmem:[#allocation7 + $0x38] sm:$0xff]  }
  0x87   :  { %3933 = vmatprep.subr.bf16.mxu0 %v4535_v0  ;;  %3953 = vmatprep.subr.bf16.mxu1 %v4535_v0  ;;  %v1141_v44 = vld [vmem:[#allocation4 + $0xa] sm:$0x1] }
  0x8a   :  { %3934 = vmatpush3.bf16.msra.mxu0 %v4216_v45  ;;  %3954 = vmatpush3.bf16.msra.mxu1 %v4217_v46  ;;  %v4272_v45 = vld [vmem:[#allocation7] sm:$0xff]   ;;  %v1249_v46 = vld [vmem:[#allocation4 + $0xb] sm:$0x1] }
  0x8b   :  { %3935 = vmatprep.subr.bf16.mxu0 %v4535_v0  ;;  %3955 = vmatprep.subr.bf16.mxu1 %v4535_v0 }
  0x8e   :  { %3936 = vmatpush3.bf16.msra.mxu0 %v4218_v47  ;;  %3956 = vmatpush3.bf16.msra.mxu1 %v4219_v48  ;;  %v4273_v47 = vld [vmem:[#allocation7] sm:$0xff]   ;;  %v4274_v48 = vld [vmem:[#allocation7 + $0x8] sm:$0xff]  }
  0x8f   :  { %3937 = vmatprep.subr.bf16.mxu0 %v4535_v0  ;;  %3957 = vmatprep.subr.bf16.mxu1 %v4535_v0 }
  0x92   :  { %3938 = vmatpush3.bf16.msra.mxu0 %v4220_v49  ;;  %3958 = vmatpush3.bf16.msra.mxu1 %v4221_v50  ;;  %v4275_v49 = vld [vmem:[#allocation7 + $0x8] sm:$0xff]   ;;  %v4276_v50 = vld [vmem:[#allocation7 + $0x10] sm:$0xff]  }
  0x93   :  { %3939 = vmatprep.subr.bf16.mxu0 %v4535_v0  ;;  %3959 = vmatprep.subr.bf16.mxu1 %v4535_v0 }
  0x96   :  { %3940 = vmatpush3.bf16.msra.mxu0 %v4222_v51  ;;  %3960 = vmatpush3.bf16.msra.mxu1 %v4223_v52  ;;  %v4277_v51 = vld [vmem:[#allocation7 + $0x10] sm:$0xff]   ;;  %v4278_v52 = vld [vmem:[#allocation7 + $0x18] sm:$0xff]  }
  0x97   :  { %3965 = vmatprep.subr.bf16.mxu0 %v4535_v0  ;;  %3985 = vmatprep.subr.bf16.mxu1 %v4535_v0 }
  0x99   :  { %3942 = vmatmul.mubr.bf16.vlgmr.msra.gmra.mrb[8].mxu0 %v493_v53  ;;  %3962 = vmatmul.mubr.bf16.vlgmr.msra.gmra.mrb[8].mxu1 %v601_v54  ;;  %v4279_v53 = vld [vmem:[#allocation7 + $0x18] sm:$0xff]   ;;  %v4280_v54 = vld [vmem:[#allocation7 + $0x20] sm:$0xff]  }
  0x9a   :  { %3966 = vmatpush3.bf16.msra.mxu0 %v4224_v55  ;;  %3986 = vmatpush3.bf16.msra.mxu1 %v4225_v56  ;;  %v4281_v55 = vld [vmem:[#allocation7 + $0x20] sm:$0xff]   ;;  %v4282_v56 = vld [vmem:[#allocation7 + $0x28] sm:$0xff]  }
  0x9b   :  { %3967 = vmatprep.subr.bf16.mxu0 %v4535_v0  ;;  %3987 = vmatprep.subr.bf16.mxu1 %v4535_v0 }
  0x9c   :  { %3981 = vmatprep.mubr.msk.bf16.mxu0 %vm4536_vm0, %v4535_v0  ;;  %4001 = vmatprep.mubr.msk.bf16.mxu1 %vm4536_vm0, %v4535_v0 }
  0x9e   :  { %3968 = vmatpush3.bf16.msra.mxu0 %v4226_v57  ;;  %3988 = vmatpush3.bf16.msra.mxu1 %v4227_v58  ;;  %v4283_v57 = vld [vmem:[#allocation7 + $0x28] sm:$0xff]   ;;  %v4284_v58 = vld [vmem:[#allocation7 + $0x30] sm:$0xff]  }
  0x9f   :  { %3969 = vmatprep.subr.bf16.mxu0 %v4535_v0  ;;  %3989 = vmatprep.subr.bf16.mxu1 %v4535_v0 }
  0xa2   :  { %3970 = vmatpush3.bf16.msra.mxu0 %v4228_v59  ;;  %3990 = vmatpush3.bf16.msra.mxu1 %v4229_v60  ;;  %v4285_v59 = vld [vmem:[#allocation7 + $0x30] sm:$0xff]   ;;  %v4286_v60 = vld [vmem:[#allocation7 + $0x38] sm:$0xff]  }
  0xa3   :  { %3971 = vmatprep.subr.bf16.mxu0 %v4535_v0  ;;  %3991 = vmatprep.subr.bf16.mxu1 %v4535_v0 }
  0xa6   :  { %3972 = vmatpush3.bf16.msra.mxu0 %v4230_v61  ;;  %3992 = vmatpush3.bf16.msra.mxu1 %v4231_v62  ;;  %v4287_v61 = vld [vmem:[#allocation7 + $0x38] sm:$0xff]  }
  0xa7   :  { %3973 = vmatprep.subr.bf16.mxu0 %v4535_v0  ;;  %3993 = vmatprep.subr.bf16.mxu1 %v4535_v0  ;;  %v1357_v62 = vld [vmem:[#allocation4 + $0xc] sm:$0x1] }
  0xaa   :  { %3974 = vmatpush3.bf16.msra.mxu0 %v4232_v63  ;;  %3994 = vmatpush3.bf16.msra.mxu1 %v4233_v1  ;;  %v4288_v63 = vld [vmem:[#allocation7] sm:$0xff]   ;;  %v1465_v1 = vld [vmem:[#allocation4 + $0xd] sm:$0x1] }
  0xab   :  { %3975 = vmatprep.subr.bf16.mxu0 %v4535_v0  ;;  %3995 = vmatprep.subr.bf16.mxu1 %v4535_v0 }
  0xae   :  { %3976 = vmatpush3.bf16.msra.mxu0 %v4234_v2  ;;  %3996 = vmatpush3.bf16.msra.mxu1 %v4235_v3  ;;  %v4289_v2 = vld [vmem:[#allocation7] sm:$0xff]   ;;  %v4290_v3 = vld [vmem:[#allocation7 + $0x8] sm:$0xff]  }
  0xaf   :  { %3977 = vmatprep.subr.bf16.mxu0 %v4535_v0  ;;  %3997 = vmatprep.subr.bf16.mxu1 %v4535_v0 }
  0xb2   :  { %3978 = vmatpush3.bf16.msra.mxu0 %v4236_v4  ;;  %3998 = vmatpush3.bf16.msra.mxu1 %v4237_v5  ;;  %v4291_v4 = vld [vmem:[#allocation7 + $0x8] sm:$0xff]   ;;  %v4292_v5 = vld [vmem:[#allocation7 + $0x10] sm:$0xff]  }
  0xb3   :  { %3979 = vmatprep.subr.bf16.mxu0 %v4535_v0  ;;  %3999 = vmatprep.subr.bf16.mxu1 %v4535_v0 }
  0xb6   :  { %3980 = vmatpush3.bf16.msra.mxu0 %v4238_v6  ;;  %4000 = vmatpush3.bf16.msra.mxu1 %v4239_v7  ;;  %v4293_v6 = vld [vmem:[#allocation7 + $0x10] sm:$0xff]   ;;  %v4294_v7 = vld [vmem:[#allocation7 + $0x18] sm:$0xff]  }
  0xb7   :  { %4005 = vmatprep.subr.bf16.mxu0 %v4535_v0  ;;  %4025 = vmatprep.subr.bf16.mxu1 %v4535_v0 }
  0xb9   :  { %3982 = vmatmul.mubr.bf16.vlgmr.msra.gmra.mrb[12].mxu0 %v709_v8  ;;  %4002 = vmatmul.mubr.bf16.vlgmr.msra.gmra.mrb[12].mxu1 %v817_v9  ;;  %v4295_v8 = vld [vmem:[#allocation7 + $0x18] sm:$0xff]   ;;  %v4296_v9 = vld [vmem:[#allocation7 + $0x20] sm:$0xff]  }
  0xba   :  { %4006 = vmatpush3.bf16.msra.mxu0 %v4240_v10  ;;  %4026 = vmatpush3.bf16.msra.mxu1 %v4241_v11  ;;  %v4297_v10 = vld [vmem:[#allocation7 + $0x20] sm:$0xff]   ;;  %v4298_v11 = vld [vmem:[#allocation7 + $0x28] sm:$0xff]  }
  0xbb   :  { %4007 = vmatprep.subr.bf16.mxu0 %v4535_v0  ;;  %4027 = vmatprep.subr.bf16.mxu1 %v4535_v0 }
  0xbc   :  { %4021 = vmatprep.mubr.msk.bf16.mxu0 %vm4536_vm0, %v4535_v0  ;;  %4041 = vmatprep.mubr.msk.bf16.mxu1 %vm4536_vm0, %v4535_v0 }
  0xbe   :  { %4008 = vmatpush3.bf16.msra.mxu0 %v4242_v12  ;;  %4028 = vmatpush3.bf16.msra.mxu1 %v4243_v13  ;;  %v4299_v12 = vld [vmem:[#allocation7 + $0x28] sm:$0xff]  }
  0xbf   :  { %4009 = vmatprep.subr.bf16.mxu0 %v4535_v0  ;;  %4029 = vmatprep.subr.bf16.mxu1 %v4535_v0 }
  0xc2   :  { %4010 = vmatpush3.bf16.msra.mxu0 %v4244_v14  ;;  %4030 = vmatpush3.bf16.msra.mxu1 %v4245_v15 }
  0xc3   :  { %4011 = vmatprep.subr.bf16.mxu0 %v4535_v0  ;;  %4031 = vmatprep.subr.bf16.mxu1 %v4535_v0 }
  0xc6   :  { %4012 = vmatpush3.bf16.msra.mxu0 %v4246_v16  ;;  %4032 = vmatpush3.bf16.msra.mxu1 %v4247_v17 }
  0xc7   :  { %4013 = vmatprep.subr.bf16.mxu0 %v4535_v0  ;;  %4033 = vmatprep.subr.bf16.mxu1 %v4535_v0 }
  0xca   :  { %4014 = vmatpush3.bf16.msra.mxu0 %v4248_v18  ;;  %4034 = vmatpush3.bf16.msra.mxu1 %v4249_v19 }
  0xcb   :  { %4015 = vmatprep.subr.bf16.mxu0 %v4535_v0  ;;  %4035 = vmatprep.subr.bf16.mxu1 %v4535_v0 }
  0xce   :  { %4016 = vmatpush3.bf16.msra.mxu0 %v4250_v20  ;;  %4036 = vmatpush3.bf16.msra.mxu1 %v4251_v21  ;;  %v4300_v20 = vld [vmem:[#allocation7 + $0x30] sm:$0xff]  }
  0xcf   :  { %4017 = vmatprep.subr.bf16.mxu0 %v4535_v0  ;;  %4037 = vmatprep.subr.bf16.mxu1 %v4535_v0 }
  0xd2   :  { %4018 = vmatpush3.bf16.msra.mxu0 %v4252_v22  ;;  %4038 = vmatpush3.bf16.msra.mxu1 %v4253_v23  ;;  %v4301_v23 = vld [vmem:[#allocation7 + $0x30] sm:$0xff]  }
  0xd3   :  { %4019 = vmatprep.subr.bf16.mxu0 %v4535_v0  ;;  %4039 = vmatprep.subr.bf16.mxu1 %v4535_v0 }
  0xd6   :  { %4020 = vmatpush3.bf16.msra.mxu0 %v4254_v24  ;;  %4040 = vmatpush3.bf16.msra.mxu1 %v4255_v25  ;;  %v4302_v25 = vld [vmem:[#allocation7 + $0x38] sm:$0xff]  }
  0xd7   :  { %4045 = vmatprep.subr.bf16.mxu0 %v4535_v0  ;;  %4065 = vmatprep.subr.bf16.mxu1 %v4535_v0 }
  0xd9   :  { %4022 = vmatmul.mubr.bf16.vlgmr.msra.gmra.mrb[16].mxu0 %v925_v26  ;;  %4042 = vmatmul.mubr.bf16.vlgmr.msra.gmra.mrb[16].mxu1 %v1033_v28  ;;  %v4303_v26 = vld [vmem:[#allocation7 + $0x38] sm:$0xff]   ;;  %v4306_v28 = vld [vmem:[#allocation9 + $0xc0] sm:$0xff]  }
  0xda   :  { %4046 = vmatpush3.bf16.msra.mxu0 %v4256_v27  ;;  %4066 = vmatpush3.bf16.msra.mxu1 %v4257_v29  ;;  %v4304_v27 = vld [vmem:[#allocation9 + $0x40] sm:$0xff]   ;;  %v1573_v29 = vld [vmem:[#allocation4 + $0xe] sm:$0x1] }
  0xdb   :  { %4047 = vmatprep.subr.bf16.mxu0 %v4535_v0  ;;  %4067 = vmatprep.subr.bf16.mxu1 %v4535_v0 }
  0xdc   :  { %4061 = vmatprep.mubr.msk.bf16.mxu0 %vm4536_vm0, %v4535_v0  ;;  %4081 = vmatprep.mubr.msk.bf16.mxu1 %vm4536_vm0, %v4535_v0 }
  0xde   :  { %4048 = vmatpush3.bf16.msra.mxu0 %v4258_v30  ;;  %4068 = vmatpush3.bf16.msra.mxu1 %v4259_v31  ;;  %v4305_v30 = vld [vmem:[#allocation9] sm:$0xff]   ;;  %v1681_v31 = vld [vmem:[#allocation4 + $0xf] sm:$0x1] }
  0xdf   :  { %4049 = vmatprep.subr.bf16.mxu0 %v4535_v0  ;;  %4069 = vmatprep.subr.bf16.mxu1 %v4535_v0 }
  0xe2   :  { %4050 = vmatpush3.bf16.msra.mxu0 %v4260_v32  ;;  %4070 = vmatpush3.bf16.msra.mxu1 %v4261_v33  ;;  %v4307_v32 = vld [vmem:[#allocation9 + $0x80] sm:$0xff]   ;;  %v4308_v33 = vld [vmem:[#allocation9 + $0x48] sm:$0xff]  }
  0xe3   :  { %4051 = vmatprep.subr.bf16.mxu0 %v4535_v0  ;;  %4071 = vmatprep.subr.bf16.mxu1 %v4535_v0 }
  0xe6   :  { %4052 = vmatpush3.bf16.msra.mxu0 %v4262_v34  ;;  %4072 = vmatpush3.bf16.msra.mxu1 %v4263_v35  ;;  %v4310_v34 = vld [vmem:[#allocation9 + $0xc8] sm:$0xff]  }
  0xe7   :  { %4053 = vmatprep.subr.bf16.mxu0 %v4535_v0  ;;  %4073 = vmatprep.subr.bf16.mxu1 %v4535_v0  ;;  %v4309_v35 = vld [vmem:[#allocation9 + $0x8] sm:$0xff]  }
  0xea   :  { %4054 = vmatpush3.bf16.msra.mxu0 %v4264_v36  ;;  %4074 = vmatpush3.bf16.msra.mxu1 %v4265_v37  ;;  %v4311_v36 = vld [vmem:[#allocation9 + $0x88] sm:$0xff]   ;;  %v4312_v37 = vld [vmem:[#allocation9 + $0x50] sm:$0xff]  }
  0xeb   :  { %4055 = vmatprep.subr.bf16.mxu0 %v4535_v0  ;;  %4075 = vmatprep.subr.bf16.mxu1 %v4535_v0 }
  0xee   :  { %4056 = vmatpush3.bf16.msra.mxu0 %v4266_v38  ;;  %4076 = vmatpush3.bf16.msra.mxu1 %v4267_v39  ;;  %v4313_v38 = vld [vmem:[#allocation9 + $0x10] sm:$0xff]  }
  0xef   :  { %4057 = vmatprep.subr.bf16.mxu0 %v4535_v0  ;;  %4077 = vmatprep.subr.bf16.mxu1 %v4535_v0  ;;  %v4315_v39 = vld [vmem:[#allocation9 + $0x90] sm:$0xff]  }
  0xf2   :  { %4058 = vmatpush3.bf16.msra.mxu0 %v4268_v40  ;;  %4078 = vmatpush3.bf16.msra.mxu1 %v4269_v41  ;;  %v4316_v40 = vld [vmem:[#allocation9 + $0x58] sm:$0xff]  }
  0xf3   :  { %4059 = vmatprep.subr.bf16.mxu0 %v4535_v0  ;;  %4079 = vmatprep.subr.bf16.mxu1 %v4535_v0  ;;  %v4318_v41 = vld [vmem:[#allocation9 + $0xd8] sm:$0xff]  }
  0xf6   :  { %4060 = vmatpush3.bf16.msra.mxu0 %v4270_v42  ;;  %4080 = vmatpush3.bf16.msra.mxu1 %v4271_v43  ;;  %v4317_v42 = vld [vmem:[#allocation9 + $0x18] sm:$0xff]  }
  0xf7   :  { %4085 = vmatprep.subr.bf16.mxu0 %v4535_v0  ;;  %4105 = vmatprep.subr.bf16.mxu1 %v4535_v0  ;;  %v4319_v43 = vld [vmem:[#allocation9 + $0x98] sm:$0xff]  }
  0xf9   :  { %4062 = vmatmul.mubr.bf16.vlgmr.msra.gmra.mrb[20].mxu0 %v1141_v44  ;;  %4082 = vmatmul.mubr.bf16.vlgmr.msra.gmra.mrb[20].mxu1 %v1249_v46  ;;  %v4320_v44 = vld [vmem:[#allocation9 + $0x60] sm:$0xff]  }
  0xfa   :  { %4086 = vmatpush3.bf16.msra.mxu0 %v4272_v45  ;;  %4106 = vmatpush3.bf16.msra.mxu1 %v4273_v47  ;;  %v4322_v45 = vld [vmem:[#allocation9 + $0xe0] sm:$0xff]  }
  0xfb   :  { %4087 = vmatprep.subr.bf16.mxu0 %v4535_v0  ;;  %4107 = vmatprep.subr.bf16.mxu1 %v4535_v0  ;;  %v4321_v46 = vld [vmem:[#allocation9 + $0x20] sm:$0xff]  }
  0xfc   :  { %4101 = vmatprep.mubr.msk.bf16.mxu0 %vm4536_vm0, %v4535_v0  ;;  %4121 = vmatprep.mubr.msk.bf16.mxu1 %vm4536_vm0, %v4535_v0  ;;  %v4323_v47 = vld [vmem:[#allocation9 + $0xa0] sm:$0xff]  }
  0xfe   :  { %4088 = vmatpush3.bf16.msra.mxu0 %v4274_v48  ;;  %4108 = vmatpush3.bf16.msra.mxu1 %v4275_v49  ;;  %v4324_v48 = vld [vmem:[#allocation9 + $0x68] sm:$0xff]  }
  0xff   :  { %4089 = vmatprep.subr.bf16.mxu0 %v4535_v0  ;;  %4109 = vmatprep.subr.bf16.mxu1 %v4535_v0  ;;  %v4326_v49 = vld [vmem:[#allocation9 + $0xe8] sm:$0xff]  }
 0x102   :  { %4090 = vmatpush3.bf16.msra.mxu0 %v4276_v50  ;;  %4110 = vmatpush3.bf16.msra.mxu1 %v4277_v51  ;;  %v4325_v50 = vld [vmem:[#allocation9 + $0x28] sm:$0xff]  }
 0x103   :  { %4091 = vmatprep.subr.bf16.mxu0 %v4535_v0  ;;  %4111 = vmatprep.subr.bf16.mxu1 %v4535_v0  ;;  %v4327_v51 = vld [vmem:[#allocation9 + $0xa8] sm:$0xff]  }
 0x106   :  { %4092 = vmatpush3.bf16.msra.mxu0 %v4278_v52  ;;  %4112 = vmatpush3.bf16.msra.mxu1 %v4279_v53  ;;  %v4328_v52 = vld [vmem:[#allocation9 + $0x70] sm:$0xff]  }
 0x107   :  { %4093 = vmatprep.subr.bf16.mxu0 %v4535_v0  ;;  %4113 = vmatprep.subr.bf16.mxu1 %v4535_v0 }
 0x10a   :  { %4094 = vmatpush3.bf16.msra.mxu0 %v4280_v54  ;;  %4114 = vmatpush3.bf16.msra.mxu1 %v4281_v55  ;;  %v4330_v54 = vld [vmem:[#allocation9 + $0xf0] sm:$0xff]  }
 0x10b   :  { %4095 = vmatprep.subr.bf16.mxu0 %v4535_v0  ;;  %4115 = vmatprep.subr.bf16.mxu1 %v4535_v0 }
 0x10e   :  { %4096 = vmatpush3.bf16.msra.mxu0 %v4282_v56  ;;  %4116 = vmatpush3.bf16.msra.mxu1 %v4283_v57 }
 0x10f   :  { %4097 = vmatprep.subr.bf16.mxu0 %v4535_v0  ;;  %4117 = vmatprep.subr.bf16.mxu1 %v4535_v0 }
 0x112   :  { %4098 = vmatpush3.bf16.msra.mxu0 %v4284_v58  ;;  %4118 = vmatpush3.bf16.msra.mxu1 %v4285_v59 }
 0x113   :  { %4099 = vmatprep.subr.bf16.mxu0 %v4535_v0  ;;  %4119 = vmatprep.subr.bf16.mxu1 %v4535_v0 }
 0x116   :  { %4100 = vmatpush3.bf16.msra.mxu0 %v4286_v60  ;;  %4120 = vmatpush3.bf16.msra.mxu1 %v4287_v61  ;;  %v4329_v61 = vld [vmem:[#allocation9 + $0x30] sm:$0xff]  }
 0x117   :  { %4125 = vmatprep.subr.bf16.mxu0 %v4535_v0  ;;  %4145 = vmatprep.subr.bf16.mxu1 %v4535_v0 }
 0x119   :  { %4102 = vmatmul.mubr.bf16.vlgmr.msra.gmra.mrb[24].mxu0 %v1357_v62  ;;  %4122 = vmatmul.mubr.bf16.vlgmr.msra.gmra.mrb[24].mxu1 %v1465_v1  ;;  %v4331_v1 = vld [vmem:[#allocation9 + $0xb0] sm:$0xff]  }
 0x11a   :  { %4126 = vmatpush3.bf16.msra.mxu0 %v4288_v63  ;;  %4146 = vmatpush3.bf16.msra.mxu1 %v4289_v2  ;;  %v4332_v2 = vld [vmem:[#allocation9 + $0x78] sm:$0xff]  }
 0x11b   :  { %4127 = vmatprep.subr.bf16.mxu0 %v4535_v0  ;;  %4147 = vmatprep.subr.bf16.mxu1 %v4535_v0 }
 0x11c   :  { %4141 = vmatprep.mubr.msk.bf16.mxu0 %vm4536_vm0, %v4535_v0  ;;  %4161 = vmatprep.mubr.msk.bf16.mxu1 %vm4536_vm0, %v4535_v0 }
 0x11e   :  { %4128 = vmatpush3.bf16.msra.mxu0 %v4290_v3  ;;  %4148 = vmatpush3.bf16.msra.mxu1 %v4291_v4  ;;  %v4334_v4 = vld [vmem:[#allocation9 + $0xf8] sm:$0xff]  }
 0x11f   :  { %4129 = vmatprep.subr.bf16.mxu0 %v4535_v0  ;;  %4149 = vmatprep.subr.bf16.mxu1 %v4535_v0 }
 0x122   :  { %4130 = vmatpush3.bf16.msra.mxu0 %v4292_v5  ;;  %4150 = vmatpush3.bf16.msra.mxu1 %v4293_v6  ;;  %v4333_v5 = vld [vmem:[#allocation9 + $0x38] sm:$0xff]  }
 0x123   :  { %4131 = vmatprep.subr.bf16.mxu0 %v4535_v0  ;;  %4151 = vmatprep.subr.bf16.mxu1 %v4535_v0  ;;  %v4335_v6 = vld [vmem:[#allocation9 + $0xb8] sm:$0xff]  }
 0x126   :  { %4132 = vmatpush3.bf16.msra.mxu0 %v4294_v7  ;;  %4152 = vmatpush3.bf16.msra.mxu1 %v4295_v8  ;;  %v4336_v7 = vld [vmem:[#allocation9 + $0x140] sm:$0xff]  }
 0x127   :  { %4133 = vmatprep.subr.bf16.mxu0 %v4535_v0  ;;  %4153 = vmatprep.subr.bf16.mxu1 %v4535_v0  ;;  %v4339_v8 = vld [vmem:[#allocation9 + $0x1c0] sm:$0xff]  }
 0x12a   :  { %4134 = vmatpush3.bf16.msra.mxu0 %v4296_v9  ;;  %4154 = vmatpush3.bf16.msra.mxu1 %v4297_v10 }
 0x12b   :  { %4135 = vmatprep.subr.bf16.mxu0 %v4535_v0  ;;  %4155 = vmatprep.subr.bf16.mxu1 %v4535_v0 }
 0x12c   :  { %v160_v13 = vpop.f32.mrb[0].mxu0  ;;  %v268_v15 = vpop.f32.mrb[0].mxu1 }
 0x12d   :  { %v166_v14 = vpack.c.bf16 %v160_v13, %v160_v13  ;;  %v3863_v16 = vpop.f32.mrb[1].mxu0  ;;  %v274_v17 = vpack.c.bf16 %v268_v15, %v268_v15  ;;  %v3883_v18 = vpop.f32.mrb[1].mxu1 }
 0x12e   :  { %v163_v19 = vpop.f32.mrb[2].mxu0  ;;  %4136 = vmatpush3.bf16.msra.mxu0 %v4298_v11  ;;  %v271_v21 = vpop.f32.mrb[2].mxu1  ;;  %4156 = vmatpush3.bf16.msra.mxu1 %v4299_v12 }
 0x12f   :  { %167 = vst [vmem:[#allocation2] sm:$0x1] %v166_v14  ;;  %v3864_v22 = vpop.f32.mrb[3].mxu0  ;;  %4137 = vmatprep.subr.bf16.mxu0 %v4535_v0  ;;  %275 = vst [vmem:[#allocation2 + $0x1] sm:$0x1] %v274_v17  ;;  %v3884_v24 = vpop.f32.mrb[3].mxu1  ;;  %4157 = vmatprep.subr.bf16.mxu1 %v4535_v0 }
 0x130   :  { %v2054_v22 = vlaneseq }
 0x132   :  { %4138 = vmatpush3.bf16.msra.mxu0 %v4300_v20  ;;  %4158 = vmatpush3.bf16.msra.mxu1 %v4301_v23  ;;  %v4537_v20 = vmov 1966171168  }
 0x133   :  { %4139 = vmatprep.subr.bf16.mxu0 %v4535_v0  ;;  %4159 = vmatprep.subr.bf16.mxu1 %v4535_v0  ;;  %v4314_v0 = vld [vmem:[#allocation9 + $0xd0] sm:$0xff]   ;;  %v2052_v21 = vunpack.c.l.s4 %v4537_v20  ;;  %v4367_v20 = vld [vmem:[#allocation9 + $0x1f8] sm:$0xff]  }
 0x136   :  { %4140 = vmatpush3.bf16.msra.mxu0 %v4302_v25  ;;  %4160 = vmatpush3.bf16.msra.mxu1 %v4303_v26 }
 0x137   :  { %3669 = vmatprep.subr.bf16.mxu0 %v4304_v27  ;;  %3691 = vmatprep.subr.bf16.mxu1 %v4306_v28 }
 0x139   :  { %4142 = vmatmul.mubr.bf16.vlgmr.msra.gmra.mrb[28].mxu0 %v1573_v29  ;;  %4162 = vmatmul.mubr.bf16.vlgmr.msra.gmra.mrb[28].mxu1 %v1681_v31 }
 0x13a   :  { %3670 = vmatpush3.bf16.msra.mxu0 %v4305_v30  ;;  %3692 = vmatpush3.bf16.msra.mxu1 %v4307_v32  ;;  %v2053_v32 = vunpack.c.0.s8 %v2052_v21  ;;  %v4366_v21 = vld [vmem:[#allocation9 + $0x138] sm:$0xff]  }
 0x13b   :  { %3671 = vmatprep.subr.bf16.mxu0 %v4308_v33  ;;  %3693 = vmatprep.subr.bf16.mxu1 %v4310_v34  ;;  %v2055_v33 = vshrl.u32 %v2054_v22, 7  ;;  %v4369_v22 = vld [vmem:[#allocation9 + $0x240] sm:$0xff]  }
 0x13d   :  { %v4766_v34 = vsub.s32 %v2053_v32, %v2055_v33  ;;  %v4377_v32 = vld [vmem:[#allocation9 + $0x250] sm:$0xff]   ;;  %v4376_v33 = vld [vmem:[#allocation9 + $0x288] sm:$0xff]  }
 0x13e   :  { %3672 = vmatpush3.bf16.msra.mxu0 %v4309_v35  ;;  %3694 = vmatpush3.bf16.msra.mxu1 %v4311_v36 }
 0x13f   :  { %3673 = vmatprep.subr.bf16.mxu0 %v4312_v37  ;;  %3695 = vmatprep.subr.bf16.mxu1 %v4314_v0 }
 0x142   :  { %3674 = vmatpush3.bf16.msra.mxu0 %v4313_v38  ;;  %3696 = vmatpush3.bf16.msra.mxu1 %v4315_v39 }
 0x143   :  { %3675 = vmatprep.subr.bf16.mxu0 %v4316_v40  ;;  %3697 = vmatprep.subr.bf16.mxu1 %v4318_v41  ;;  %v4337_v41 = vld [vmem:[#allocation9 + $0x100] sm:$0xff]  }
 0x146   :  { %3676 = vmatpush3.bf16.msra.mxu0 %v4317_v42  ;;  %3698 = vmatpush3.bf16.msra.mxu1 %v4319_v43 }
 0x147   :  { %3677 = vmatprep.subr.bf16.mxu0 %v4320_v44  ;;  %3699 = vmatprep.subr.bf16.mxu1 %v4322_v45  ;;  %v4340_v45 = vld [vmem:[#allocation9 + $0x180] sm:$0xff]  }
 0x14a   :  { %3678 = vmatpush3.bf16.msra.mxu0 %v4321_v46  ;;  %3700 = vmatpush3.bf16.msra.mxu1 %v4323_v47  ;;  %v4341_v46 = vld [vmem:[#allocation9 + $0x148] sm:$0xff]  }
 0x14b   :  { %3679 = vmatprep.subr.bf16.mxu0 %v4324_v48  ;;  %3701 = vmatprep.subr.bf16.mxu1 %v4326_v49  ;;  %v4343_v48 = vld [vmem:[#allocation9 + $0x1c8] sm:$0xff]  }
 0x14c   :  { %v376_v53 = vpop.f32.mrb[4].mxu0  ;;  %v484_v56 = vpop.f32.mrb[4].mxu1 }
 0x14d   :  { %v382_v55 = vpack.c.bf16 %v376_v53, %v376_v53  ;;  %v3903_v57 = vpop.f32.mrb[5].mxu0  ;;  %v490_v58 = vpack.c.bf16 %v484_v56, %v484_v56  ;;  %v3923_v59 = vpop.f32.mrb[5].mxu1  ;;  %v4347_v53 = vld [vmem:[#allocation9 + $0x1d0] sm:$0xff]  }
 0x14e   :  { %v379_v60 = vpop.f32.mrb[6].mxu0  ;;  %3680 = vmatpush3.bf16.msra.mxu0 %v4325_v50  ;;  %v487_v62 = vpop.f32.mrb[6].mxu1  ;;  %3702 = vmatpush3.bf16.msra.mxu1 %v4327_v51  ;;  %v4342_v50 = vld [vmem:[#allocation9 + $0x108] sm:$0xff]   ;;  %v4345_v51 = vld [vmem:[#allocation9 + $0x150] sm:$0xff]   ;;  %v4351_v57 = vld [vmem:[#allocation9 + $0x1d8] sm:$0xff]  }
 0x14f   :  { %383 = vst [vmem:[#allocation2 + $0x2] sm:$0x1] %v382_v55  ;;  %v3904_v63 = vpop.f32.mrb[7].mxu0  ;;  %3681 = vmatprep.subr.bf16.mxu0 %v4328_v52  ;;  %491 = vst [vmem:[#allocation2 + $0x3] sm:$0x1] %v490_v58  ;;  %v3924_v3 = vpop.f32.mrb[7].mxu1  ;;  %3703 = vmatprep.subr.bf16.mxu1 %v4330_v54 }
 0x150   :  { %v4344_v52 = vld [vmem:[#allocation9 + $0x188] sm:$0xff]   ;;  %v4346_v54 = vld [vmem:[#allocation9 + $0x110] sm:$0xff]   ;;  %v4349_v55 = vld [vmem:[#allocation9 + $0x158] sm:$0xff]  }
 0x151   :  { %v4348_v56 = vld [vmem:[#allocation9 + $0x190] sm:$0xff]   ;;  %v4350_v58 = vld [vmem:[#allocation9 + $0x118] sm:$0xff]   ;;  %v4353_v59 = vld [vmem:[#allocation9 + $0x160] sm:$0xff]  }
 0x152   :  { %3682 = vmatpush3.bf16.msra.mxu0 %v4329_v61  ;;  %3704 = vmatpush3.bf16.msra.mxu1 %v4331_v1  ;;  %v4352_v60 = vld [vmem:[#allocation9 + $0x198] sm:$0xff]   ;;  %v4355_v61 = vld [vmem:[#allocation9 + $0x1e0] sm:$0xff]  }
 0x153   :  { %3683 = vmatprep.subr.bf16.mxu0 %v4332_v2  ;;  %3705 = vmatprep.subr.bf16.mxu1 %v4334_v4  ;;  %v4354_v63 = vld [vmem:[#allocation9 + $0x120] sm:$0xff]   ;;  %v4357_v4 = vld [vmem:[#allocation9 + $0x168] sm:$0xff]  }
 0x156   :  { %3684 = vmatpush3.bf16.msra.mxu0 %v4333_v5  ;;  %3706 = vmatpush3.bf16.msra.mxu1 %v4335_v6 }
 0x157   :  { %3713 = vmatprep.subr.bf16.mxu0 %v4336_v7  ;;  %3735 = vmatprep.subr.bf16.mxu1 %v4339_v8  ;;  %v4356_v8 = vld [vmem:[#allocation9 + $0x1a0] sm:$0xff]  }
 0x16c   :  { %v592_v9 = vpop.f32.mrb[8].mxu0  ;;  %v700_v11 = vpop.f32.mrb[8].mxu1 }
 0x16d   :  { %v598_v10 = vpack.c.bf16 %v592_v9, %v592_v9  ;;  %v3943_v12 = vpop.f32.mrb[9].mxu0  ;;  %v706_v13 = vpack.c.bf16 %v700_v11, %v700_v11  ;;  %v3963_v14 = vpop.f32.mrb[9].mxu1  ;;  %v4359_v11 = vld [vmem:[#allocation9 + $0x1e8] sm:$0xff]  }
 0x16e   :  { %v595_v15 = vpop.f32.mrb[10].mxu0  ;;  %v703_v16 = vpop.f32.mrb[10].mxu1  ;;  %v4361_v14 = vld [vmem:[#allocation9 + $0x170] sm:$0xff]  }
 0x16f   :  { %599 = vst [vmem:[#allocation2 + $0x4] sm:$0x1] %v598_v10  ;;  %v3944_v17 = vpop.f32.mrb[11].mxu0  ;;  %707 = vst [vmem:[#allocation2 + $0x5] sm:$0x1] %v706_v13  ;;  %v3964_v18 = vpop.f32.mrb[11].mxu1 }
 0x170   :  { %v4358_v13 = vld [vmem:[#allocation9 + $0x128] sm:$0xff]   ;;  %v4363_v16 = vld [vmem:[#allocation9 + $0x1f0] sm:$0xff]   ;;  %v4365_v18 = vld [vmem:[#allocation9 + $0x178] sm:$0xff]  }
 0x171   :  { %v4360_v15 = vld [vmem:[#allocation9 + $0x1a8] sm:$0xff]   ;;  %v4362_v17 = vld [vmem:[#allocation9 + $0x130] sm:$0xff]  }
 0x18c   :  { %v808_v19 = vpop.f32.mrb[12].mxu0  ;;  %v916_v24 = vpop.f32.mrb[12].mxu1 }
 0x18d   :  { %v814_v23 = vpack.c.bf16 %v808_v19, %v808_v19  ;;  %v3983_v25 = vpop.f32.mrb[13].mxu0  ;;  %v922_v26 = vpack.c.bf16 %v916_v24, %v916_v24  ;;  %v4003_v27 = vpop.f32.mrb[13].mxu1  ;;  %v4364_v19 = vld [vmem:[#allocation9 + $0x1b0] sm:$0xff]  }
 0x18e   :  { %v811_v28 = vpop.f32.mrb[14].mxu0  ;;  %v919_v29 = vpop.f32.mrb[14].mxu1  ;;  %v4371_v25 = vld [vmem:[#allocation9 + $0x2c0] sm:$0xff]   ;;  %v4373_v27 = vld [vmem:[#allocation9 + $0x248] sm:$0xff]  }
 0x18f   :  { %815 = vst [vmem:[#allocation2 + $0x6] sm:$0x1] %v814_v23  ;;  %v3984_v30 = vpop.f32.mrb[15].mxu0  ;;  %923 = vst [vmem:[#allocation2 + $0x7] sm:$0x1] %v922_v26  ;;  %v4004_v31 = vpop.f32.mrb[15].mxu1 }
 0x190   :  { %v4368_v23 = vld [vmem:[#allocation9 + $0x1b8] sm:$0xff]   ;;  %v4370_v26 = vld [vmem:[#allocation9 + $0x200] sm:$0xff]   ;;  %v4375_v30 = vld [vmem:[#allocation9 + $0x2c8] sm:$0xff]  }
 0x191   :  { %v4372_v28 = vld [vmem:[#allocation9 + $0x280] sm:$0xff]   ;;  %v4374_v31 = vld [vmem:[#allocation9 + $0x208] sm:$0xff]  }
 0x196   :  { %v1788_v35 = vld [vmem:[#allocation2] sm:$0xff] }
 0x197   :  { %v2057_v36 = vrot.slane %v1788_v35, %v4766_v34  ;;  %v2050_v37 = vcombine.high %v1788_v35, %v1788_v35  ;;  %v4379_v35 = vld [vmem:[#allocation9 + $0x2d0] sm:$0xff]  }
 0x199   :  { %v2065_v0 = vcombine.high %v2057_v36, %v2057_v36  ;;  %v4770_v38 = vrot.slane %v2050_v37, %v4766_v34  ;;  %v2073_v39 = vrot.slane %v2057_v36, %v4766_v34  ;;  %v4378_v36 = vld [vmem:[#allocation9 + $0x210] sm:$0xff]   ;;  %v4381_v37 = vld [vmem:[#allocation9 + $0x258] sm:$0xff]  }
 0x19b   :  { %v2087_v40 = vrot.slane %v2065_v0, %v4766_v34  ;;  %v2066_v42 = vcombine.high %v4770_v38, %v4770_v38  ;;  %v2095_v47 = vcombine.high %v2073_v39, %v2073_v39  ;;  %v2080_v24 = vrot.slane %v4770_v38, %v4766_v34  ;;  %v4380_v0 = vld [vmem:[#allocation9 + $0x290] sm:$0xff]   ;;  %v4383_v38 = vld [vmem:[#allocation9 + $0x2d8] sm:$0xff]  }
 0x19d   :  { %2964 = vmatprep.mubr.bf16.mxu0 %v2087_v40  ;;  %v2097_v43 = vcombine.high %v2087_v40, %v2087_v40  ;;  %v2094_v44 = vrot.slane %v2066_v42, %v4766_v34  ;;  %v2096_v29 = vcombine.high %v2080_v24, %v2080_v24  ;;  %v4385_v40 = vld [vmem:[#allocation9 + $0x260] sm:$0xff]  }
 0x19e   :  { %2965 = vmatmul.mubr.bf16.vlgmr.msra.gmra.mrb[32].mxu0 %v2073_v39  ;;  %v4382_v39 = vld [vmem:[#allocation9 + $0x218] sm:$0xff]   ;;  %v4387_v42 = vld [vmem:[#allocation9 + $0x2e0] sm:$0xff]  }
 0x19f   :  { %3714 = vmatpush3.bf16.msra.mxu0 %v4337_v41  ;;  %3004 = vmatprep.mubr.bf16.mxu1 %v2097_v43  ;;  %v2098_v49 = vcombine.high %v2094_v44, %v2094_v44  ;;  %v4384_v41 = vld [vmem:[#allocation9 + $0x298] sm:$0xff]  }
 0x1a0   :  { %3044 = vmatprep.mubr.bf16.mxu0 %v2094_v44  ;;  %3005 = vmatmul.mubr.bf16.vlgmr.msra.gmra.mrb[32].mxu1 %v2095_v47  ;;  %v4386_v44 = vld [vmem:[#allocation9 + $0x220] sm:$0xff]  }
 0x1a1   :  { %3736 = vmatpush3.bf16.msra.mxu1 %v4340_v45  ;;  %3715 = vmatprep.subr.bf16.mxu0 %v4341_v46 }
 0x1a2   :  { %3084 = vmatprep.mubr.bf16.mxu1 %v2098_v49  ;;  %3737 = vmatprep.subr.bf16.mxu1 %v4343_v48  ;;  %v4389_v48 = vld [vmem:[#allocation9 + $0x268] sm:$0xff]  }
 0x1a3   :  { %3716 = vmatpush3.bf16.msra.mxu0 %v4342_v50 }
 0x1a4   :  { %3717 = vmatprep.subr.bf16.mxu0 %v4345_v51 }
 0x1a5   :  { %3738 = vmatpush3.bf16.msra.mxu1 %v4344_v52  ;;  %v4388_v52 = vld [vmem:[#allocation9 + $0x2a0] sm:$0xff]  }
 0x1a6   :  { %3739 = vmatprep.subr.bf16.mxu1 %v4347_v53 }
 0x1a7   :  { %3718 = vmatpush3.bf16.msra.mxu0 %v4346_v54 }
 0x1a8   :  { %3719 = vmatprep.subr.bf16.mxu0 %v4349_v55  ;;  %v4391_v55 = vld [vmem:[#allocation9 + $0x2e8] sm:$0xff]  }
 0x1a9   :  { %3740 = vmatpush3.bf16.msra.mxu1 %v4348_v56 }
 0x1aa   :  { %3741 = vmatprep.subr.bf16.mxu1 %v4351_v57  ;;  %v4390_v57 = vld [vmem:[#allocation9 + $0x228] sm:$0xff]  }
 0x1ab   :  { %3720 = vmatpush3.bf16.msra.mxu0 %v4350_v58  ;;  %v4393_v58 = vld [vmem:[#allocation9 + $0x270] sm:$0xff]  }
 0x1ac   :  { %v1024_v62 = vpop.f32.mrb[16].mxu0  ;;  %v1132_v2 = vpop.f32.mrb[16].mxu1  ;;  %3721 = vmatprep.subr.bf16.mxu0 %v4353_v59  ;;  %v4392_v59 = vld [vmem:[#allocation9 + $0x2a8] sm:$0xff]  }
 0x1ad   :  { %v1030_v1 = vpack.c.bf16 %v1024_v62, %v1024_v62  ;;  %v4023_v3 = vpop.f32.mrb[17].mxu0  ;;  %v1138_v5 = vpack.c.bf16 %v1132_v2, %v1132_v2  ;;  %3742 = vmatpush3.bf16.msra.mxu1 %v4352_v60  ;;  %v4043_v6 = vpop.f32.mrb[17].mxu1  ;;  %v4395_v60 = vld [vmem:[#allocation9 + $0x2f0] sm:$0xff]   ;;  %v4397_v62 = vld [vmem:[#allocation9 + $0x278] sm:$0xff]  }
 0x1ae   :  { %v1027_v7 = vpop.f32.mrb[18].mxu0  ;;  %v1135_v9 = vpop.f32.mrb[18].mxu1  ;;  %3743 = vmatprep.subr.bf16.mxu1 %v4355_v61  ;;  %v4394_v61 = vld [vmem:[#allocation9 + $0x230] sm:$0xff]   ;;  %v4398_v2 = vld [vmem:[#allocation9 + $0x238] sm:$0xff]   ;;  %v4401_v3 = vld [vmem:[#allocation9 + $0x340] sm:$0xff]  }
 0x1af   :  { %1031 = vst [vmem:[#allocation2 + $0x8] sm:$0x1] %v1030_v1  ;;  %v4024_v10 = vpop.f32.mrb[19].mxu0  ;;  %1139 = vst [vmem:[#allocation2 + $0x9] sm:$0x1] %v1138_v5  ;;  %3722 = vmatpush3.bf16.msra.mxu0 %v4354_v63  ;;  %v4044_v12 = vpop.f32.mrb[19].mxu1 }
 0x1b0   :  { %3723 = vmatprep.subr.bf16.mxu0 %v4357_v4  ;;  %v4396_v63 = vld [vmem:[#allocation9 + $0x2b0] sm:$0xff]   ;;  %v4399_v1 = vld [vmem:[#allocation9 + $0x2f8] sm:$0xff]   ;;  %v4404_v5 = vld [vmem:[#allocation9 + $0x3c0] sm:$0xff]  }
 0x1b1   :  { %3744 = vmatpush3.bf16.msra.mxu1 %v4356_v8  ;;  %v4400_v4 = vld [vmem:[#allocation9 + $0x2b8] sm:$0xff]  }
 0x1b2   :  { %3745 = vmatprep.subr.bf16.mxu1 %v4359_v11 }
 0x1b3   :  { %3724 = vmatpush3.bf16.msra.mxu0 %v4358_v13 }
 0x1b4   :  { %3725 = vmatprep.subr.bf16.mxu0 %v4361_v14 }
 0x1b5   :  { %3746 = vmatpush3.bf16.msra.mxu1 %v4360_v15 }
 0x1b6   :  { %3747 = vmatprep.subr.bf16.mxu1 %v4363_v16 }
 0x1b7   :  { %3726 = vmatpush3.bf16.msra.mxu0 %v4362_v17 }
 0x1b8   :  { %3727 = vmatprep.subr.bf16.mxu0 %v4365_v18 }
 0x1b9   :  { %3748 = vmatpush3.bf16.msra.mxu1 %v4364_v19 }
 0x1ba   :  { %3749 = vmatprep.subr.bf16.mxu1 %v4367_v20 }
 0x1bb   :  { %3728 = vmatpush3.bf16.msra.mxu0 %v4366_v21 }
 0x1bc   :  { %3757 = vmatprep.subr.bf16.mxu0 %v4369_v22 }
 0x1bd   :  { %3750 = vmatpush3.bf16.msra.mxu1 %v4368_v23 }
 0x1be   :  { %3045 = vmatmul.mubr.bf16.vlgmr.msra.gmra.mrb[36].mxu0 %v2080_v24  ;;  %3779 = vmatprep.subr.bf16.mxu1 %v4371_v25 }
 0x1bf   :  { %3758 = vmatpush3.bf16.msra.mxu0 %v4370_v26 }
 0x1c0   :  { %3085 = vmatmul.mubr.bf16.vlgmr.msra.gmra.mrb[36].mxu1 %v2096_v29  ;;  %3759 = vmatprep.subr.bf16.mxu0 %v4373_v27 }
 0x1c1   :  { %3780 = vmatpush3.bf16.msra.mxu1 %v4372_v28 }
 0x1c2   :  { %3781 = vmatprep.subr.bf16.mxu1 %v4375_v30 }
 0x1c3   :  { %3760 = vmatpush3.bf16.msra.mxu0 %v4374_v31 }
 0x1c4   :  { %3761 = vmatprep.subr.bf16.mxu0 %v4377_v32 }
 0x1c5   :  { %3782 = vmatpush3.bf16.msra.mxu1 %v4376_v33  ;;  %v4402_v33 = vld [vmem:[#allocation9 + $0x300] sm:$0xff]  }
 0x1c6   :  { %3783 = vmatprep.subr.bf16.mxu1 %v4379_v35 }
 0x1c7   :  { %3762 = vmatpush3.bf16.msra.mxu0 %v4378_v36 }
 0x1c8   :  { %3763 = vmatprep.subr.bf16.mxu0 %v4381_v37 }
 0x1c9   :  { %3784 = vmatpush3.bf16.msra.mxu1 %v4380_v0  ;;  %v4405_v0 = vld [vmem:[#allocation9 + $0x380] sm:$0xff]  }
 0x1ca   :  { %3785 = vmatprep.subr.bf16.mxu1 %v4383_v38  ;;  %v4406_v38 = vld [vmem:[#allocation9 + $0x348] sm:$0xff]  }
 0x1cb   :  { %3764 = vmatpush3.bf16.msra.mxu0 %v4382_v39 }
 0x1cc   :  { %v1240_v43 = vpop.f32.mrb[20].mxu0  ;;  %v1348_v46 = vpop.f32.mrb[20].mxu1  ;;  %3765 = vmatprep.subr.bf16.mxu0 %v4385_v40  ;;  %v4408_v40 = vld [vmem:[#allocation9 + $0x3c8] sm:$0xff]  }
 0x1cd   :  { %v1246_v45 = vpack.c.bf16 %v1240_v43, %v1240_v43  ;;  %v4063_v47 = vpop.f32.mrb[21].mxu0  ;;  %v1354_v49 = vpack.c.bf16 %v1348_v46, %v1348_v46  ;;  %v4083_v50 = vpop.f32.mrb[21].mxu1  ;;  %3786 = vmatpush3.bf16.msra.mxu1 %v4384_v41  ;;  %v4410_v43 = vld [vmem:[#allocation9 + $0x350] sm:$0xff]  }
 0x1ce   :  { %v1243_v51 = vpop.f32.mrb[22].mxu0  ;;  %v1351_v53 = vpop.f32.mrb[22].mxu1  ;;  %3787 = vmatprep.subr.bf16.mxu1 %v4387_v42  ;;  %v4407_v42 = vld [vmem:[#allocation9 + $0x308] sm:$0xff]   ;;  %v4411_v46 = vld [vmem:[#allocation9 + $0x310] sm:$0xff]   ;;  %v4414_v47 = vld [vmem:[#allocation9 + $0x358] sm:$0xff]  }
 0x1cf   :  { %1247 = vst [vmem:[#allocation2 + $0xa] sm:$0x1] %v1246_v45  ;;  %v4064_v54 = vpop.f32.mrb[23].mxu0  ;;  %1355 = vst [vmem:[#allocation2 + $0xb] sm:$0x1] %v1354_v49  ;;  %v4084_v56 = vpop.f32.mrb[23].mxu1  ;;  %3766 = vmatpush3.bf16.msra.mxu0 %v4386_v44 }
 0x1d0   :  { %3767 = vmatprep.subr.bf16.mxu0 %v4389_v48  ;;  %v4409_v44 = vld [vmem:[#allocation9 + $0x388] sm:$0xff]   ;;  %v4412_v45 = vld [vmem:[#allocation9 + $0x3d0] sm:$0xff]   ;;  %v4416_v49 = vld [vmem:[#allocation9 + $0x3d8] sm:$0xff]  }
 0x1d1   :  { %3788 = vmatpush3.bf16.msra.mxu1 %v4388_v52  ;;  %v4413_v48 = vld [vmem:[#allocation9 + $0x390] sm:$0xff]   ;;  %v4415_v50 = vld [vmem:[#allocation9 + $0x318] sm:$0xff]   ;;  %v4418_v51 = vld [vmem:[#allocation9 + $0x360] sm:$0xff]  }
 0x1d2   :  { %3789 = vmatprep.subr.bf16.mxu1 %v4391_v55  ;;  %v4417_v52 = vld [vmem:[#allocation9 + $0x398] sm:$0xff]   ;;  %v4420_v53 = vld [vmem:[#allocation9 + $0x3e0] sm:$0xff]   ;;  %v4422_v55 = vld [vmem:[#allocation9 + $0x368] sm:$0xff]  }
 0x1d3   :  { %3768 = vmatpush3.bf16.msra.mxu0 %v4390_v57  ;;  %v4419_v54 = vld [vmem:[#allocation9 + $0x320] sm:$0xff]   ;;  %v4424_v57 = vld [vmem:[#allocation9 + $0x3e8] sm:$0xff]  }
 0x1d4   :  { %3769 = vmatprep.subr.bf16.mxu0 %v4393_v58  ;;  %v4421_v56 = vld [vmem:[#allocation9 + $0x3a0] sm:$0xff]   ;;  %v4423_v58 = vld [vmem:[#allocation9 + $0x328] sm:$0xff]  }
 0x1d5   :  { %3790 = vmatpush3.bf16.msra.mxu1 %v4392_v59  ;;  %v4426_v59 = vld [vmem:[#allocation9 + $0x370] sm:$0xff]  }
 0x1d6   :  { %3791 = vmatprep.subr.bf16.mxu1 %v4395_v60  ;;  %v4425_v60 = vld [vmem:[#allocation9 + $0x3a8] sm:$0xff]  }
 0x1d7   :  { %3770 = vmatpush3.bf16.msra.mxu0 %v4394_v61  ;;  %v4428_v61 = vld [vmem:[#allocation9 + $0x3f0] sm:$0xff]  }
 0x1d8   :  { %3771 = vmatprep.subr.bf16.mxu0 %v4397_v62  ;;  %v4427_v62 = vld [vmem:[#allocation9 + $0x330] sm:$0xff]  }
 0x1d9   :  { %3792 = vmatpush3.bf16.msra.mxu1 %v4396_v63  ;;  %v4430_v63 = vld [vmem:[#allocation9 + $0x378] sm:$0xff]  }
 0x1da   :  { %3793 = vmatprep.subr.bf16.mxu1 %v4399_v1  ;;  %v4429_v1 = vld [vmem:[#allocation9 + $0x3b0] sm:$0xff]  }
 0x1db   :  { %3772 = vmatpush3.bf16.msra.mxu0 %v4398_v2  ;;  %v4432_v2 = vld [vmem:[#allocation9 + $0x3f8] sm:$0xff]  }
 0x1dc   :  { %3801 = vmatprep.subr.bf16.mxu0 %v4401_v3  ;;  %v4431_v3 = vld [vmem:[#allocation9 + $0x338] sm:$0xff]  }
 0x1dd   :  { %3794 = vmatpush3.bf16.msra.mxu1 %v4400_v4  ;;  %v4433_v4 = vld [vmem:[#allocation9 + $0x3b8] sm:$0xff]  }
 0x1de   :  { %3823 = vmatprep.subr.bf16.mxu1 %v4404_v5 }
 0x1ec   :  { %v1456_v6 = vpop.f32.mrb[24].mxu0  ;;  %v1564_v8 = vpop.f32.mrb[24].mxu1 }
 0x1ed   :  { %v1462_v7 = vpack.c.bf16 %v1456_v6, %v1456_v6  ;;  %v4103_v9 = vpop.f32.mrb[25].mxu0  ;;  %v1570_v10 = vpack.c.bf16 %v1564_v8, %v1564_v8  ;;  %v4123_v11 = vpop.f32.mrb[25].mxu1  ;;  %v2047_v8 = vstv %s4808_s3  ;;  %s4538_s3 = smov [#allocation10]  }
 0x1ee   :  { %v1459_v12 = vpop.f32.mrb[26].mxu0  ;;  %v1567_v13 = vpop.f32.mrb[26].mxu1  ;;  %s3259_s26 = sshll.u32 %s4538_s3, 4  ;;  %s3260_s26 = int_to_ptr.vmem [resolvable:$true] %s3259_s26 }
 0x1ef   :  { %1463 = vst [vmem:[#allocation2 + $0xc] sm:$0x1] %v1462_v7  ;;  %v4104_v14 = vpop.f32.mrb[27].mxu0  ;;  %1571 = vst [vmem:[#allocation2 + $0xd] sm:$0x1] %v1570_v10  ;;  %v4124_v15 = vpop.f32.mrb[27].mxu1  ;;  %p4505_p11 = scmp.lt.s32.totalorder %s3260_s26, %s3260_s26 }
 0x1f0   :  { %s4500_s29 = scalar_lea.vmem %s3260_s26, 32 }
 0x1f1   :  { %p4501_p10 = scmp.ne.s32.totalorder %s3260_s26, %s4500_s29  ;;  %p4506_p12 = scmp.lt.s32.totalorder %s4500_s29, %s4500_s29 }
 0x1f3   :  { %p4507_p13 = por %p4506_p12, %p4505_p11 }
 0x1f5   :  { %p4508_p0 = pnand %p4507_p13, %p4501_p10 }
 0x20c   :  { %v1672_v16 = vpop.f32.mrb[28].mxu0  ;;  %v1780_v18 = vpop.f32.mrb[28].mxu1 }
 0x20d   :  { %v1678_v17 = vpack.c.bf16 %v1672_v16, %v1672_v16  ;;  %v4143_v19 = vpop.f32.mrb[29].mxu0  ;;  %v1786_v20 = vpack.c.bf16 %v1780_v18, %v1780_v18  ;;  %v4163_v21 = vpop.f32.mrb[29].mxu1 }
 0x20e   :  { %v1675_v22 = vpop.f32.mrb[30].mxu0  ;;  %v1783_v23 = vpop.f32.mrb[30].mxu1 }
 0x20f   :  { %1679 = vst [vmem:[#allocation2 + $0xe] sm:$0x1] %v1678_v17  ;;  %v4144_v24 = vpop.f32.mrb[31].mxu0  ;;  %1787 = vst [vmem:[#allocation2 + $0xf] sm:$0x1] %v1786_v20  ;;  %v4164_v25 = vpop.f32.mrb[31].mxu1 }
 0x216   :  { %v1789_v26 = vld [vmem:[#allocation2 + $0x8] sm:$0xff] }
 0x217   :  { %v2106_v27 = vrot.slane %v1789_v26, %v4766_v34  ;;  %v2099_v28 = vcombine.high %v1789_v26, %v1789_v26 }
 0x219   :  { %v2114_v29 = vcombine.high %v2106_v27, %v2106_v27  ;;  %v4781_v30 = vrot.slane %v2099_v28, %v4766_v34  ;;  %v2122_v31 = vrot.slane %v2106_v27, %v4766_v34 }
 0x21b   :  { %v2136_v32 = vrot.slane %v2114_v29, %v4766_v34  ;;  %v2115_v35 = vcombine.high %v4781_v30, %v4781_v30  ;;  %v2144_v39 = vcombine.high %v2122_v31, %v2122_v31  ;;  %v2129_v5 = vrot.slane %v4781_v30, %v4766_v34 }
 0x21d   :  { %3124 = vmatprep.mubr.bf16.mxu0 %v2136_v32  ;;  %v2146_v36 = vcombine.high %v2136_v32, %v2136_v32  ;;  %v2143_v37 = vrot.slane %v2115_v35, %v4766_v34  ;;  %v2145_v6 = vcombine.high %v2129_v5, %v2129_v5 }
 0x21e   :  { %3125 = vmatmul.mubr.bf16.vlgmr.msra.gmra.mrb[40].mxu0 %v2122_v31 }
 0x21f   :  { %3802 = vmatpush3.bf16.msra.mxu0 %v4402_v33  ;;  %3164 = vmatprep.mubr.bf16.mxu1 %v2146_v36  ;;  %v2147_v41 = vcombine.high %v2143_v37, %v2143_v37 }
 0x220   :  { %3204 = vmatprep.mubr.bf16.mxu0 %v2143_v37  ;;  %3165 = vmatmul.mubr.bf16.vlgmr.msra.gmra.mrb[40].mxu1 %v2144_v39 }
 0x221   :  { %3824 = vmatpush3.bf16.msra.mxu1 %v4405_v0  ;;  %3803 = vmatprep.subr.bf16.mxu0 %v4406_v38 }
 0x222   :  { %3244 = vmatprep.mubr.bf16.mxu1 %v2147_v41  ;;  %3825 = vmatprep.subr.bf16.mxu1 %v4408_v40 }
 0x223   :  { %3804 = vmatpush3.bf16.msra.mxu0 %v4407_v42 }
 0x224   :  { %3805 = vmatprep.subr.bf16.mxu0 %v4410_v43 }
 0x225   :  { %3826 = vmatpush3.bf16.msra.mxu1 %v4409_v44 }
 0x226   :  { %3827 = vmatprep.subr.bf16.mxu1 %v4412_v45 }
 0x227   :  { %3806 = vmatpush3.bf16.msra.mxu0 %v4411_v46 }
 0x228   :  { %3807 = vmatprep.subr.bf16.mxu0 %v4414_v47 }
 0x229   :  { %3828 = vmatpush3.bf16.msra.mxu1 %v4413_v48 }
 0x22a   :  { %3829 = vmatprep.subr.bf16.mxu1 %v4416_v49 }
 0x22b   :  { %3808 = vmatpush3.bf16.msra.mxu0 %v4415_v50 }
 0x22c   :  { %3809 = vmatprep.subr.bf16.mxu0 %v4418_v51 }
 0x22d   :  { %3830 = vmatpush3.bf16.msra.mxu1 %v4417_v52 }
 0x22e   :  { %3831 = vmatprep.subr.bf16.mxu1 %v4420_v53 }
 0x22f   :  { %3810 = vmatpush3.bf16.msra.mxu0 %v4419_v54 }
 0x230   :  { %3811 = vmatprep.subr.bf16.mxu0 %v4422_v55 }
 0x231   :  { %3832 = vmatpush3.bf16.msra.mxu1 %v4421_v56 }
 0x232   :  { %3833 = vmatprep.subr.bf16.mxu1 %v4424_v57 }
 0x233   :  { %3812 = vmatpush3.bf16.msra.mxu0 %v4423_v58 }
 0x234   :  { %3813 = vmatprep.subr.bf16.mxu0 %v4426_v59 }
 0x235   :  { %3834 = vmatpush3.bf16.msra.mxu1 %v4425_v60 }
 0x236   :  { %3835 = vmatprep.subr.bf16.mxu1 %v4428_v61 }
 0x237   :  { %3814 = vmatpush3.bf16.msra.mxu0 %v4427_v62 }
 0x238   :  { %3815 = vmatprep.subr.bf16.mxu0 %v4430_v63 }
 0x239   :  { %3836 = vmatpush3.bf16.msra.mxu1 %v4429_v1 }
 0x23a   :  { %3837 = vmatprep.subr.bf16.mxu1 %v4432_v2 }
 0x23b   :  { %3816 = vmatpush3.bf16.msra.mxu0 %v4431_v3 }
 0x23d   :  { %3838 = vmatpush3.bf16.msra.mxu1 %v4433_v4 }
 0x23e   :  { %3205 = vmatmul.mubr.bf16.vlgmr.msra.gmra.mrb[44].mxu0 %v2129_v5 }
 0x240   :  { %3245 = vmatmul.mubr.bf16.vlgmr.msra.gmra.mrb[44].mxu1 %v2145_v6 }
 0x271   :  { %v3685_v7 = vpop.f32.mrb[32].mxu0 }
 0x272   :  { %v3686_v9 = vpop.f32.mrb[33].mxu0 }
 0x273   :  { %v3687_v10 = vadd.f32 %v3686_v9, %v3685_v7  ;;  %v3688_v11 = vpop.f32.mrb[34].mxu0  ;;  %v3707_v12 = vpop.f32.mrb[32].mxu1 }
 0x274   :  { %v3689_v13 = vpop.f32.mrb[35].mxu0  ;;  %v3708_v14 = vpop.f32.mrb[33].mxu1 }
 0x275   :  { %v2967_v15 = vadd.f32 %v3687_v10, %v2047_v8  ;;  %v3709_v16 = vadd.f32 %v3708_v14, %v3707_v12  ;;  %v3710_v17 = vpop.f32.mrb[34].mxu1 }
 0x276   :  { %v3711_v34 = vpop.f32.mrb[35].mxu1 }
 0x277   :  { %v3007_v18 = vadd.f32 %v3709_v16, %v2967_v15 }
 0x291   :  { %v3729_v19 = vpop.f32.mrb[36].mxu0 }
 0x292   :  { %v3730_v20 = vpop.f32.mrb[37].mxu0 }
 0x293   :  { %v3731_v21 = vadd.f32 %v3730_v20, %v3729_v19  ;;  %v3732_v22 = vpop.f32.mrb[38].mxu0  ;;  %v3751_v23 = vpop.f32.mrb[36].mxu1 }
 0x294   :  { %v3733_v24 = vpop.f32.mrb[39].mxu0  ;;  %v3752_v25 = vpop.f32.mrb[37].mxu1 }
 0x295   :  { %v3047_v26 = vadd.f32 %v3731_v21, %v3007_v18  ;;  %v3753_v27 = vadd.f32 %v3752_v25, %v3751_v23  ;;  %v3754_v28 = vpop.f32.mrb[38].mxu1 }
 0x296   :  { %v3755_v29 = vpop.f32.mrb[39].mxu1 }
 0x297   :  { %v3087_v30 = vadd.f32 %v3753_v27, %v3047_v26 }
 0x2f1   :  { %v3773_v31 = vpop.f32.mrb[40].mxu0 }
 0x2f2   :  { %v3774_v32 = vpop.f32.mrb[41].mxu0 }
 0x2f3   :  { %v3775_v33 = vadd.f32 %v3774_v32, %v3773_v31  ;;  %v3776_v35 = vpop.f32.mrb[42].mxu0  ;;  %v3795_v36 = vpop.f32.mrb[40].mxu1 }
 0x2f4   :  { %v3777_v37 = vpop.f32.mrb[43].mxu0  ;;  %v3796_v0 = vpop.f32.mrb[41].mxu1 }
 0x2f5   :  { %v3127_v38 = vadd.f32 %v3775_v33, %v3087_v30  ;;  %v3797_v39 = vadd.f32 %v3796_v0, %v3795_v36  ;;  %v3798_v40 = vpop.f32.mrb[42].mxu1 }
 0x2f6   :  { %v3799_v41 = vpop.f32.mrb[43].mxu1 }
 0x2f7   :  { %v3167_v42 = vadd.f32 %v3797_v39, %v3127_v38 }
 0x311   :  { %v3817_v43 = vpop.f32.mrb[44].mxu0 }
 0x312   :  { %v3818_v44 = vpop.f32.mrb[45].mxu0 }
 0x313   :  { %v3819_v45 = vadd.f32 %v3818_v44, %v3817_v43  ;;  %v3820_v46 = vpop.f32.mrb[46].mxu0  ;;  %v3839_v47 = vpop.f32.mrb[44].mxu1 }
 0x314   :  { %v3821_v48 = vpop.f32.mrb[47].mxu0  ;;  %v3840_v49 = vpop.f32.mrb[45].mxu1 }
 0x315   :  { %v3207_v50 = vadd.f32 %v3819_v45, %v3167_v42  ;;  %v3841_v51 = vadd.f32 %v3840_v49, %v3839_v47  ;;  %v3842_v52 = vpop.f32.mrb[46].mxu1 }
 0x316   :  { %v3843_v53 = vpop.f32.mrb[47].mxu1 }
 0x317   :  { %v3247_v54 = vadd.f32 %v3841_v51, %v3207_v50 }
 0x319   :  { %3252 = vst [vmem:[#allocation10] sm:$0x3] %v3247_v54 }
 0x31a   :  { %4511 = shalt.err (!%p4508_p0)
}
 0x31b   :  { %s4512_s6 = scalar_lea.hbm %s4809_s4, 32 }
 0x31c   :  { %p4513_p1 = scmp.ne.s32.totalorder %s4809_s4, %s4512_s6  ;;  %p4516_p2 = scmp.lt.u32.totalorder %s4512_s6, %s4809_s4 }
 0x31e   :  { %p4518_p3 = pnand %p4516_p2, %p4513_p1 }
 0x320   :  { %4521 = shalt.err (!%p4518_p3)
}
 0x321   :  { %3262 = dma.vmem_to_hbm [thread:$0]  %s3260_s26, 32, %s4809_s4, [#allocation6]  }
 0x322   :  { %4526 = dma.done.wait [#allocation6], 32  }
 0x323   :  { %4527 = vsyncadd [#allocation6], 4294967264 }
 0x324   :  { %3266 = vsyncpa [#allocation5], 1 }
 0x325   :  { %3267 = vsyncpa [#allocation8], 1 }
 0x326   :  { %3268 = vsyncpa [#allocation6], 1 }

</bundles_post_ra>
